<compile_context>
chip_gen: v7x
topology: tpu7x:2x2x1
jax: 0.10.0
libtpu: 0.0.40
codegen_flags: <defaults>
</compile_context>

<pallas_src>
import jax
import jax.numpy as jnp
from jax.experimental import pallas as pl
from jax.experimental.pallas import tpu as pltpu

ITER = 3                    # iteration
NUM = 9                     # num_neighbor (3x3 window incl. center)
IN_C = 4                    # rgb (3) ++ dep (1)
GUIDE_C = ITER * NUM + 2    # 29 guide channels
HALO = 4                    # propagation halo (3) + 1 alignment row per side

_OFFSETS = [(dy, dx) for dy in (-1, 0, 1) for dx in (-1, 0, 1)]


# --------------------------------------------------------------------------
# Kernel factory (all sizes static / closed over).
# --------------------------------------------------------------------------
def _make_kernel(TH, HG, HC, WT, H_img, W_img):
    # TH: interior rows written per tile; HG = TH + 8 guide rows; HC = HG + 2
    # conv-input rows; WT: lane-padded width; H_img/W_img: true image extent.

    def kernel(x_ref, bmat_ref, bias_ref, out_ref, slab_ref, sem):
        b = pl.program_id(0)
        t = pl.program_id(1)
        r0 = pl.multiple_of(t * TH, 8)          # first slab row (padded-x coords)

        # ---- halo fetch: rows [r0, r0+HC) of each channel -> 2-D f32 slab ----
        copies = []
        for ci in range(IN_C):
            copy_desc = pltpu.make_async_copy(
                x_ref.at[b, ci, pl.ds(r0, HC), :],
                slab_ref.at[pl.ds(ci * HC, HC), :],
                sem.at[ci])
            copy_desc.start()
            copies.append(copy_desc)
        for copy_desc in copies:
            copy_desc.wait()

        slab = slab_ref[...]                                  # (IN_C*HC, WT)

        # dx-shifted copies; lane-roll wrap lands only in zero padding columns.
        slab_m1 = pltpu.roll(slab, shift=1, axis=1)           # source col w-1
        slab_p1 = pltpu.roll(slab, shift=WT - 1, axis=1)      # source col w+1
        slab3 = jnp.concatenate([slab_m1, slab, slab_p1], axis=0)
        slab3 = slab3.astype(jnp.bfloat16)                    # (K, WT) MXU rhs

        def conv_chunk(ch0, n_ch):
            # Banded weight rows for guide channels [ch0, ch0+n_ch): a single
            # 2-D (n_ch*HG, K) x (K, WT) MXU matmul, f32 accumulate.
            bc = bmat_ref[pl.ds(ch0 * HG, n_ch * HG), :]
            return jnp.dot(bc, slab3, preferred_element_type=jnp.float32)

        # ---- confidence / pred_init (guide channels 27, 28) ----
        cp_chunk = conv_chunk(ITER * NUM, 2)                  # (2*HG, WT)
        conf = jax.nn.sigmoid(cp_chunk[0:HG, :] + bias_ref[ITER * NUM])
        pred = cp_chunk[HG:2 * HG, :] + bias_ref[ITER * NUM + 1]

        # sparse depth over the guide rows (channel 3 of the f32 slab)
        dep = slab_ref[pl.ds(3 * HC + 1, HG), :]
        gate = conf * (dep > 0.0).astype(jnp.float32)         # hoisted

        # boundary masks in global image coordinates (hoisted out of the loop)
        row = jax.lax.broadcasted_iota(jnp.int32, (HG, WT), 0) + (t * TH - HALO)
        col = jax.lax.broadcasted_iota(jnp.int32, (HG, WT), 1)
        masks = []
        for dy, dx in _OFFSETS:
            ok = ((row + dy >= 0) & (row + dy < H_img) &
                  (col + dx >= 0) & (col + dx < W_img))
            masks.append(ok.astype(jnp.float32))

        # ---- DySPN propagation (iteration-local affinity chunks) ----
        for it in range(ITER):
            aff_all = conv_chunk(it * NUM, NUM)               # (9*HG, WT)
            aff = []
            denom = jnp.zeros((HG, WT), jnp.float32)
            for k, (dy, dx) in enumerate(_OFFSETS):
                a = aff_all[k * HG:(k + 1) * HG, :] + bias_ref[it * NUM + k]
                if (dy, dx) != (0, 0):
                    a = a * masks[k]      # fold boundary mask into affinity
                aff.append(a)
                denom = denom + jnp.abs(a)
            # masked-consistent normalisation; one EUP reciprocal per iteration
            inv = pl.reciprocal(denom + 1e-6, approx=True)

            p_m1 = pltpu.roll(pred, shift=1, axis=0)          # source row h-1
            p_p1 = pltpu.roll(pred, shift=HG - 1, axis=0)     # source row h+1
            rows_ = {-1: p_m1, 0: pred, 1: p_p1}
            nxt = jnp.zeros((HG, WT), jnp.float32)
            for k, (dy, dx) in enumerate(_OFFSETS):
                src = rows_[dy]
                if dx == -1:
                    src = pltpu.roll(src, shift=1, axis=1)
                elif dx == 1:
                    src = pltpu.roll(src, shift=WT - 1, axis=1)
                nxt = nxt + (aff[k] * inv) * src
            pred = nxt
            # confidence-gated sparse-depth replacement
            pred = pred + gate * (dep - pred)

        # write the TH interior rows only (lane-dense full-WT store)
        out_ref[...] = pred[HALO:HALO + TH, :][None, :, :]

    return kernel


# --------------------------------------------------------------------------
# Wrapper: padding, banded weight-matrix construction, pallas_call.
# --------------------------------------------------------------------------
def _round_up(x, m):
    return ((x + m - 1) // m) * m


def init_params(key):
    kw, kb = jax.random.split(key)
    w = 0.05 * jax.random.normal(kw, (GUIDE_C, IN_C, 3, 3), jnp.float32)
    b = 0.01 * jax.random.normal(kb, (GUIDE_C,), jnp.float32)
    return {"w": w, "b": b}


def dyspn_forward(rgb0, dep, params):
    B, _, H, W = rgb0.shape
    TH = 8 if H <= 32 else 24            # interior rows per tile (mult of 8)
    assert TH % 8 == 0
    tiles = (H + TH - 1) // TH
    Hp = tiles * TH
    HG = TH + 2 * HALO                   # guide rows per tile (8-aligned)
    HC = HG + 2                          # conv-input rows per tile
    WT = _round_up(W + 1, 128)           # lane-padded width (>=1 zero column)

    wconv = params["w"]                  # (GUIDE_C, IN_C, 3, 3)
    bias = params["b"].astype(jnp.float32)

    # channel-major padded input: image rows at [HALO+1, HALO+1+H), cols [0, W)
    x = jnp.concatenate([rgb0, dep], axis=1).astype(jnp.float32)   # (B,4,H,W)
    xpad = jnp.pad(
        x, ((0, 0), (0, 0), (HALO + 1, HALO + 1 + Hp - H), (0, WT - W)))

    # Banded conv weight matrix:
    #   guide[c*HG+g, w] = sum_{x,i,h} B[c*HG+g, (x*IN_C+i)*HC+h] * slab3[...,w]
    # with B[c*HG+g, (x*IN_C+i)*HC+h] = wconv[c, i, h-g, x] for h-g in {0,1,2}.
    sel = (jnp.arange(HC)[None, None, :] ==
           (jnp.arange(HG)[None, :, None] + jnp.arange(3)[:, None, None])
           ).astype(jnp.float32)                        # (3, HG, HC)
    bmat = jnp.einsum('cidx,dgh->cgxih', wconv, sel)    # (C, HG, 3, IN_C, HC)
    K = 3 * IN_C * HC
    bmat = bmat.reshape(GUIDE_C * HG, K).astype(jnp.bfloat16)

    kernel = _make_kernel(TH, HG, HC, WT, H, W)
    out = pl.pallas_call(
        kernel,
        out_shape=jax.ShapeDtypeStruct((B, Hp, WT), jnp.float32),
        grid=(B, tiles),
        in_specs=[
            pl.BlockSpec(memory_space=pl.ANY),                      # x in HBM
            pl.BlockSpec((GUIDE_C * HG, K), lambda b, t: (0, 0)),   # banded W
            pl.BlockSpec(memory_space=pltpu.MemorySpace.SMEM),      # bias
        ],
        out_specs=pl.BlockSpec((1, TH, WT), lambda b, t: (b, t, 0)),
        scratch_shapes=[
            pltpu.VMEM((IN_C * HC, WT), jnp.float32),   # input slab
            pltpu.SemaphoreType.DMA((IN_C,)),           # per-channel halo DMAs
        ],
        compiler_params=pltpu.CompilerParams(
            dimension_semantics=("parallel", "parallel"),
            vmem_limit_bytes=32 * 1024 * 1024,          # footprint-sized, v7x-safe
        ),
    )(xpad, bmat, bias)

    return out[:, None, :H, :W]                         # NCHW (B, 1, H, W)


if __name__ == "__main__":
    key = jax.random.PRNGKey(0)
    kp, k1, k2, k3 = jax.random.split(key, 4)
    B, H, W = 2, 16, 16

    params = init_params(kp)
    rgb0 = jax.random.normal(k1, (B, 3, H, W), jnp.float32)
    # sparse-ish non-negative depth: zero out ~70% of pixels
    dep_dense = jnp.abs(jax.random.normal(k2, (B, 1, H, W), jnp.float32)) * 4.0
    mask = (jax.random.uniform(k3, (B, 1, H, W)) > 0.7).astype(jnp.float32)
    dep = dep_dense * mask

    out = jax.jit(dyspn_forward)(rgb0, dep, params)
    jax.block_until_ready(out)
    assert out.shape == (B, 1, H, W)
    assert bool(jnp.isfinite(out).all())
    print("KERNEL_OK")
</pallas_src>

<mosaic_0001>
module attributes {stable_mosaic.version = 11 : i64} {
  func.func @kernel(%arg0: i32, %arg1: i32, %arg2: memref<2x4x26x128xf32, #tpu.memory_space<any>>, %arg3: memref<464x216xbf16, #tpu.memory_space<vmem>>, %arg4: memref<29xf32, #tpu.memory_space<smem>>, %arg5: memref<1x8x128xf32, #tpu.memory_space<vmem>>, %arg6: memref<72x128xf32, #tpu.memory_space<vmem>>, %arg7: memref<4x!tpu.dma_semaphore, #tpu.memory_space<semaphore_mem>>) attributes {dimension_semantics = [#tpu.dimension_semantics<parallel>, #tpu.dimension_semantics<parallel>], iteration_bounds = array<i64: 2, 2>, scalar_prefetch = 0 : i64, scratch_operands = 2 : i64, tpu.core_type = #tpu.core_type<tc>, window_params = [{}, {pipeline_mode = #tpu.pipeline_mode<synchronous>, transform_indices = @transform_1, window_bounds = array<i64: 464, 216>}, {transform_indices = @transform_2, window_bounds = array<i64: 29>}, {transform_indices = @transform_3, window_bounds = array<i64: 1, 8, 128>}]} {
    %c8_i32 = arith.constant 8 : i32
    %0 = arith.muli %arg1, %c8_i32 : i32
    %1 = tpu.assume_multiple %0, 8 : i32
    %c0_i32 = arith.constant 0 : i32
    %c0_i32_0 = arith.constant 0 : i32
    %c0_i32_1 = arith.constant 0 : i32
    %2 = tpu.memref_slice %arg2[%arg0, %c0_i32, %1, %c0_i32_1] : memref<2x4x26x128xf32, #tpu.memory_space<any>> -> memref<1x1x18x128xf32, #tpu.memory_space<any>>
    %3 = tpu.memref_squeeze %2 : memref<1x1x18x128xf32, #tpu.memory_space<any>> -> memref<18x128xf32, #tpu.memory_space<any>>
    %c0_i32_2 = arith.constant 0 : i32
    %c0_i32_3 = arith.constant 0 : i32
    %4 = tpu.memref_slice %arg6[%c0_i32_2, %c0_i32_3] : memref<72x128xf32, #tpu.memory_space<vmem>> -> memref<18x128xf32, #tpu.memory_space<vmem>>
    %5 = tpu.memref_slice %arg7[%c0_i32_0] : memref<4x!tpu.dma_semaphore, #tpu.memory_space<semaphore_mem>> -> memref<1x!tpu.dma_semaphore, #tpu.memory_space<semaphore_mem>>
    %6 = tpu.memref_squeeze %5 : memref<1x!tpu.dma_semaphore, #tpu.memory_space<semaphore_mem>> -> memref<!tpu.dma_semaphore, #tpu.memory_space<semaphore_mem>>
    tpu.enqueue_dma source(%3 : memref<18x128xf32, #tpu.memory_space<any>>) target(%4 : memref<18x128xf32, #tpu.memory_space<vmem>>) target_semaphore(%6 : memref<!tpu.dma_semaphore, #tpu.memory_space<semaphore_mem>>)
    %c1_i32 = arith.constant 1 : i32
    %c1_i32_4 = arith.constant 1 : i32
    %c0_i32_5 = arith.constant 0 : i32
    %7 = tpu.memref_slice %arg2[%arg0, %c1_i32, %1, %c0_i32_5] : memref<2x4x26x128xf32, #tpu.memory_space<any>> -> memref<1x1x18x128xf32, #tpu.memory_space<any>>
    %8 = tpu.memref_squeeze %7 : memref<1x1x18x128xf32, #tpu.memory_space<any>> -> memref<18x128xf32, #tpu.memory_space<any>>
    %c18_i32 = arith.constant 18 : i32
    %c0_i32_6 = arith.constant 0 : i32
    %9 = tpu.memref_slice %arg6[%c18_i32, %c0_i32_6] : memref<72x128xf32, #tpu.memory_space<vmem>> -> memref<18x128xf32, #tpu.memory_space<vmem>>
    %10 = tpu.memref_slice %arg7[%c1_i32_4] : memref<4x!tpu.dma_semaphore, #tpu.memory_space<semaphore_mem>> -> memref<1x!tpu.dma_semaphore, #tpu.memory_space<semaphore_mem>>
    %11 = tpu.memref_squeeze %10 : memref<1x!tpu.dma_semaphore, #tpu.memory_space<semaphore_mem>> -> memref<!tpu.dma_semaphore, #tpu.memory_space<semaphore_mem>>
    tpu.enqueue_dma source(%8 : memref<18x128xf32, #tpu.memory_space<any>>) target(%9 : memref<18x128xf32, #tpu.memory_space<vmem>>) target_semaphore(%11 : memref<!tpu.dma_semaphore, #tpu.memory_space<semaphore_mem>>)
    %c2_i32 = arith.constant 2 : i32
    %c2_i32_7 = arith.constant 2 : i32
    %c0_i32_8 = arith.constant 0 : i32
    %12 = tpu.memref_slice %arg2[%arg0, %c2_i32, %1, %c0_i32_8] : memref<2x4x26x128xf32, #tpu.memory_space<any>> -> memref<1x1x18x128xf32, #tpu.memory_space<any>>
    %13 = tpu.memref_squeeze %12 : memref<1x1x18x128xf32, #tpu.memory_space<any>> -> memref<18x128xf32, #tpu.memory_space<any>>
    %c36_i32 = arith.constant 36 : i32
    %c0_i32_9 = arith.constant 0 : i32
    %14 = tpu.memref_slice %arg6[%c36_i32, %c0_i32_9] : memref<72x128xf32, #tpu.memory_space<vmem>> -> memref<18x128xf32, #tpu.memory_space<vmem>>
    %15 = tpu.memref_slice %arg7[%c2_i32_7] : memref<4x!tpu.dma_semaphore, #tpu.memory_space<semaphore_mem>> -> memref<1x!tpu.dma_semaphore, #tpu.memory_space<semaphore_mem>>
    %16 = tpu.memref_squeeze %15 : memref<1x!tpu.dma_semaphore, #tpu.memory_space<semaphore_mem>> -> memref<!tpu.dma_semaphore, #tpu.memory_space<semaphore_mem>>
    tpu.enqueue_dma source(%13 : memref<18x128xf32, #tpu.memory_space<any>>) target(%14 : memref<18x128xf32, #tpu.memory_space<vmem>>) target_semaphore(%16 : memref<!tpu.dma_semaphore, #tpu.memory_space<semaphore_mem>>)
    %c3_i32 = arith.constant 3 : i32
    %c3_i32_10 = arith.constant 3 : i32
    %c0_i32_11 = arith.constant 0 : i32
    %17 = tpu.memref_slice %arg2[%arg0, %c3_i32, %1, %c0_i32_11] : memref<2x4x26x128xf32, #tpu.memory_space<any>> -> memref<1x1x18x128xf32, #tpu.memory_space<any>>
    %18 = tpu.memref_squeeze %17 : memref<1x1x18x128xf32, #tpu.memory_space<any>> -> memref<18x128xf32, #tpu.memory_space<any>>
    %c54_i32 = arith.constant 54 : i32
    %c0_i32_12 = arith.constant 0 : i32
    %19 = tpu.memref_slice %arg6[%c54_i32, %c0_i32_12] : memref<72x128xf32, #tpu.memory_space<vmem>> -> memref<18x128xf32, #tpu.memory_space<vmem>>
    %20 = tpu.memref_slice %arg7[%c3_i32_10] : memref<4x!tpu.dma_semaphore, #tpu.memory_space<semaphore_mem>> -> memref<1x!tpu.dma_semaphore, #tpu.memory_space<semaphore_mem>>
    %21 = tpu.memref_squeeze %20 : memref<1x!tpu.dma_semaphore, #tpu.memory_space<semaphore_mem>> -> memref<!tpu.dma_semaphore, #tpu.memory_space<semaphore_mem>>
    tpu.enqueue_dma source(%18 : memref<18x128xf32, #tpu.memory_space<any>>) target(%19 : memref<18x128xf32, #tpu.memory_space<vmem>>) target_semaphore(%21 : memref<!tpu.dma_semaphore, #tpu.memory_space<semaphore_mem>>)
    %c0_i32_13 = arith.constant 0 : i32
    %c0_i32_14 = arith.constant 0 : i32
    %c0_i32_15 = arith.constant 0 : i32
    %22 = tpu.memref_slice %arg2[%arg0, %c0_i32_13, %1, %c0_i32_15] : memref<2x4x26x128xf32, #tpu.memory_space<any>> -> memref<1x1x18x128xf32, #tpu.memory_space<any>>
    %23 = tpu.memref_squeeze %22 : memref<1x1x18x128xf32, #tpu.memory_space<any>> -> memref<18x128xf32, #tpu.memory_space<any>>
    %c0_i32_16 = arith.constant 0 : i32
    %c0_i32_17 = arith.constant 0 : i32
    %24 = tpu.memref_slice %arg6[%c0_i32_16, %c0_i32_17] : memref<72x128xf32, #tpu.memory_space<vmem>> -> memref<18x128xf32, #tpu.memory_space<vmem>>
    %25 = tpu.memref_slice %arg7[%c0_i32_14] : memref<4x!tpu.dma_semaphore, #tpu.memory_space<semaphore_mem>> -> memref<1x!tpu.dma_semaphore, #tpu.memory_space<semaphore_mem>>
    %26 = tpu.memref_squeeze %25 : memref<1x!tpu.dma_semaphore, #tpu.memory_space<semaphore_mem>> -> memref<!tpu.dma_semaphore, #tpu.memory_space<semaphore_mem>>
    tpu.wait_dma2 semaphore(%26 : memref<!tpu.dma_semaphore, #tpu.memory_space<semaphore_mem>>) src(%23 : memref<18x128xf32, #tpu.memory_space<any>>) dst(%24 : memref<18x128xf32, #tpu.memory_space<vmem>>)
    %c1_i32_18 = arith.constant 1 : i32
    %c1_i32_19 = arith.constant 1 : i32
    %c0_i32_20 = arith.constant 0 : i32
    %27 = tpu.memref_slice %arg2[%arg0, %c1_i32_18, %1, %c0_i32_20] : memref<2x4x26x128xf32, #tpu.memory_space<any>> -> memref<1x1x18x128xf32, #tpu.memory_space<any>>
    %28 = tpu.memref_squeeze %27 : memref<1x1x18x128xf32, #tpu.memory_space<any>> -> memref<18x128xf32, #tpu.memory_space<any>>
    %c18_i32_21 = arith.constant 18 : i32
    %c0_i32_22 = arith.constant 0 : i32
    %29 = tpu.memref_slice %arg6[%c18_i32_21, %c0_i32_22] : memref<72x128xf32, #tpu.memory_space<vmem>> -> memref<18x128xf32, #tpu.memory_space<vmem>>
    %30 = tpu.memref_slice %arg7[%c1_i32_19] : memref<4x!tpu.dma_semaphore, #tpu.memory_space<semaphore_mem>> -> memref<1x!tpu.dma_semaphore, #tpu.memory_space<semaphore_mem>>
    %31 = tpu.memref_squeeze %30 : memref<1x!tpu.dma_semaphore, #tpu.memory_space<semaphore_mem>> -> memref<!tpu.dma_semaphore, #tpu.memory_space<semaphore_mem>>
    tpu.wait_dma2 semaphore(%31 : memref<!tpu.dma_semaphore, #tpu.memory_space<semaphore_mem>>) src(%28 : memref<18x128xf32, #tpu.memory_space<any>>) dst(%29 : memref<18x128xf32, #tpu.memory_space<vmem>>)
    %c2_i32_23 = arith.constant 2 : i32
    %c2_i32_24 = arith.constant 2 : i32
    %c0_i32_25 = arith.constant 0 : i32
    %32 = tpu.memref_slice %arg2[%arg0, %c2_i32_23, %1, %c0_i32_25] : memref<2x4x26x128xf32, #tpu.memory_space<any>> -> memref<1x1x18x128xf32, #tpu.memory_space<any>>
    %33 = tpu.memref_squeeze %32 : memref<1x1x18x128xf32, #tpu.memory_space<any>> -> memref<18x128xf32, #tpu.memory_space<any>>
    %c36_i32_26 = arith.constant 36 : i32
    %c0_i32_27 = arith.constant 0 : i32
    %34 = tpu.memref_slice %arg6[%c36_i32_26, %c0_i32_27] : memref<72x128xf32, #tpu.memory_space<vmem>> -> memref<18x128xf32, #tpu.memory_space<vmem>>
    %35 = tpu.memref_slice %arg7[%c2_i32_24] : memref<4x!tpu.dma_semaphore, #tpu.memory_space<semaphore_mem>> -> memref<1x!tpu.dma_semaphore, #tpu.memory_space<semaphore_mem>>
    %36 = tpu.memref_squeeze %35 : memref<1x!tpu.dma_semaphore, #tpu.memory_space<semaphore_mem>> -> memref<!tpu.dma_semaphore, #tpu.memory_space<semaphore_mem>>
    tpu.wait_dma2 semaphore(%36 : memref<!tpu.dma_semaphore, #tpu.memory_space<semaphore_mem>>) src(%33 : memref<18x128xf32, #tpu.memory_space<any>>) dst(%34 : memref<18x128xf32, #tpu.memory_space<vmem>>)
    %c3_i32_28 = arith.constant 3 : i32
    %c3_i32_29 = arith.constant 3 : i32
    %c0_i32_30 = arith.constant 0 : i32
    %37 = tpu.memref_slice %arg2[%arg0, %c3_i32_28, %1, %c0_i32_30] : memref<2x4x26x128xf32, #tpu.memory_space<any>> -> memref<1x1x18x128xf32, #tpu.memory_space<any>>
    %38 = tpu.memref_squeeze %37 : memref<1x1x18x128xf32, #tpu.memory_space<any>> -> memref<18x128xf32, #tpu.memory_space<any>>
    %c54_i32_31 = arith.constant 54 : i32
    %c0_i32_32 = arith.constant 0 : i32
    %39 = tpu.memref_slice %arg6[%c54_i32_31, %c0_i32_32] : memref<72x128xf32, #tpu.memory_space<vmem>> -> memref<18x128xf32, #tpu.memory_space<vmem>>
    %40 = tpu.memref_slice %arg7[%c3_i32_29] : memref<4x!tpu.dma_semaphore, #tpu.memory_space<semaphore_mem>> -> memref<1x!tpu.dma_semaphore, #tpu.memory_space<semaphore_mem>>
    %41 = tpu.memref_squeeze %40 : memref<1x!tpu.dma_semaphore, #tpu.memory_space<semaphore_mem>> -> memref<!tpu.dma_semaphore, #tpu.memory_space<semaphore_mem>>
    tpu.wait_dma2 semaphore(%41 : memref<!tpu.dma_semaphore, #tpu.memory_space<semaphore_mem>>) src(%38 : memref<18x128xf32, #tpu.memory_space<any>>) dst(%39 : memref<18x128xf32, #tpu.memory_space<vmem>>)
    %c0 = arith.constant 0 : index
    %c0_33 = arith.constant 0 : index
    %42 = vector.load %arg6[%c0, %c0_33] : memref<72x128xf32, #tpu.memory_space<vmem>>, vector<72x128xf32>
    %c1_i32_34 = arith.constant 1 : i32
    %43 = tpu.dynamic_rotate %42 by %c1_i32_34 dim 1 : vector<72x128xf32>, i32 -> vector<72x128xf32>
    %c127_i32 = arith.constant 127 : i32
    %44 = tpu.dynamic_rotate %42 by %c127_i32 dim 1 : vector<72x128xf32>, i32 -> vector<72x128xf32>
    %45 = tpu.concatenate %43, %42, %44 in 0 : vector<72x128xf32>, vector<72x128xf32>, vector<72x128xf32> -> vector<216x128xf32>
    %46 = arith.truncf %45 : vector<216x128xf32> to vector<216x128xbf16>
    %c432 = arith.constant 432 : index
    %c0_35 = arith.constant 0 : index
    %47 = vector.load %arg3[%c432, %c0_35] : memref<464x216xbf16, #tpu.memory_space<vmem>>, vector<32x216xbf16>
    %cst = arith.constant dense<0.000000e+00> : vector<32x128xf32>
    %48 = tpu.matmul %47, %46, %cst {dimension_numbers = #tpu.dot_dimension_numbers<[1], [0], [0], [1], [0, 0, 1, 1], [], []>} : vector<32x216xbf16>, vector<216x128xbf16>, vector<32x128xf32> -> vector<32x128xf32>
    %49 = vector.extract_strided_slice %48 {offsets = [0, 0], sizes = [16, 128], strides = [1, 1]} : vector<32x128xf32> to vector<16x128xf32>
    %c27 = arith.constant 27 : index
    %50 = memref.load %arg4[%c27] : memref<29xf32, #tpu.memory_space<smem>>
    %51 = vector.broadcast %50 : f32 to vector<16x128xf32>
    %52 = arith.addf %49, %51 : vector<16x128xf32>
    %53 = arith.negf %52 : vector<16x128xf32>
    %54 = math.exp %53 : vector<16x128xf32>
    %cst_36 = arith.constant 1.000000e+00 : f32
    %55 = vector.broadcast %cst_36 : f32 to vector<16x128xf32>
    %56 = arith.addf %55, %54 : vector<16x128xf32>
    %57 = arith.divf %55, %56 : vector<16x128xf32>
    %58 = vector.extract_strided_slice %48 {offsets = [16, 0], sizes = [16, 128], strides = [1, 1]} : vector<32x128xf32> to vector<16x128xf32>
    %c28 = arith.constant 28 : index
    %59 = memref.load %arg4[%c28] : memref<29xf32, #tpu.memory_space<smem>>
    %60 = vector.broadcast %59 : f32 to vector<16x128xf32>
    %61 = arith.addf %58, %60 : vector<16x128xf32>
    %c55 = arith.constant 55 : index
    %c0_37 = arith.constant 0 : index
    %62 = vector.load %arg6[%c55, %c0_37] : memref<72x128xf32, #tpu.memory_space<vmem>>, vector<16x128xf32>
    %cst_38 = arith.constant 0.000000e+00 : f32
    %63 = vector.broadcast %cst_38 : f32 to vector<16x128xf32>
    %64 = arith.cmpf ogt, %62, %63 : vector<16x128xf32>
    %65 = arith.extui %64 : vector<16x128xi1> to vector<16x128xi32>
    %66 = arith.sitofp %65 : vector<16x128xi32> to vector<16x128xf32>
    %67 = arith.mulf %57, %66 : vector<16x128xf32>
    %68 = tpu.iota {dimensions = array<i32: 0>} : vector<16x128xi32>
    %c8_i32_39 = arith.constant 8 : i32
    %69 = arith.muli %arg1, %c8_i32_39 : i32
    %c4_i32 = arith.constant 4 : i32
    %70 = arith.subi %69, %c4_i32 : i32
    %71 = vector.broadcast %70 : i32 to vector<16x128xi32>
    %72 = arith.addi %68, %71 : vector<16x128xi32>
    %73 = tpu.iota {dimensions = array<i32: 1>} : vector<16x128xi32>
    %c-1_i32 = arith.constant -1 : i32
    %74 = vector.broadcast %c-1_i32 : i32 to vector<16x128xi32>
    %75 = arith.addi %72, %74 : vector<16x128xi32>
    %c0_i32_40 = arith.constant 0 : i32
    %76 = vector.broadcast %c0_i32_40 : i32 to vector<16x128xi32>
    %77 = arith.cmpi sge, %75, %76 : vector<16x128xi32>
    %c-1_i32_41 = arith.constant -1 : i32
    %78 = vector.broadcast %c-1_i32_41 : i32 to vector<16x128xi32>
    %79 = arith.addi %72, %78 : vector<16x128xi32>
    %c16_i32 = arith.constant 16 : i32
    %80 = vector.broadcast %c16_i32 : i32 to vector<16x128xi32>
    %81 = arith.cmpi slt, %79, %80 : vector<16x128xi32>
    %82 = arith.andi %77, %81 : vector<16x128xi1>
    %c-1_i32_42 = arith.constant -1 : i32
    %83 = vector.broadcast %c-1_i32_42 : i32 to vector<16x128xi32>
    %84 = arith.addi %73, %83 : vector<16x128xi32>
    %c0_i32_43 = arith.constant 0 : i32
    %85 = vector.broadcast %c0_i32_43 : i32 to vector<16x128xi32>
    %86 = arith.cmpi sge, %84, %85 : vector<16x128xi32>
    %87 = arith.andi %82, %86 : vector<16x128xi1>
    %c-1_i32_44 = arith.constant -1 : i32
    %88 = vector.broadcast %c-1_i32_44 : i32 to vector<16x128xi32>
    %89 = arith.addi %73, %88 : vector<16x128xi32>
    %c16_i32_45 = arith.constant 16 : i32
    %90 = vector.broadcast %c16_i32_45 : i32 to vector<16x128xi32>
    %91 = arith.cmpi slt, %89, %90 : vector<16x128xi32>
    %92 = arith.andi %87, %91 : vector<16x128xi1>
    %93 = arith.extui %92 : vector<16x128xi1> to vector<16x128xi32>
    %94 = arith.sitofp %93 : vector<16x128xi32> to vector<16x128xf32>
    %c-1_i32_46 = arith.constant -1 : i32
    %95 = vector.broadcast %c-1_i32_46 : i32 to vector<16x128xi32>
    %96 = arith.addi %72, %95 : vector<16x128xi32>
    %c0_i32_47 = arith.constant 0 : i32
    %97 = vector.broadcast %c0_i32_47 : i32 to vector<16x128xi32>
    %98 = arith.cmpi sge, %96, %97 : vector<16x128xi32>
    %c-1_i32_48 = arith.constant -1 : i32
    %99 = vector.broadcast %c-1_i32_48 : i32 to vector<16x128xi32>
    %100 = arith.addi %72, %99 : vector<16x128xi32>
    %c16_i32_49 = arith.constant 16 : i32
    %101 = vector.broadcast %c16_i32_49 : i32 to vector<16x128xi32>
    %102 = arith.cmpi slt, %100, %101 : vector<16x128xi32>
    %103 = arith.andi %98, %102 : vector<16x128xi1>
    %c0_i32_50 = arith.constant 0 : i32
    %104 = vector.broadcast %c0_i32_50 : i32 to vector<16x128xi32>
    %105 = arith.addi %73, %104 : vector<16x128xi32>
    %c0_i32_51 = arith.constant 0 : i32
    %106 = vector.broadcast %c0_i32_51 : i32 to vector<16x128xi32>
    %107 = arith.cmpi sge, %105, %106 : vector<16x128xi32>
    %108 = arith.andi %103, %107 : vector<16x128xi1>
    %c0_i32_52 = arith.constant 0 : i32
    %109 = vector.broadcast %c0_i32_52 : i32 to vector<16x128xi32>
    %110 = arith.addi %73, %109 : vector<16x128xi32>
    %c16_i32_53 = arith.constant 16 : i32
    %111 = vector.broadcast %c16_i32_53 : i32 to vector<16x128xi32>
    %112 = arith.cmpi slt, %110, %111 : vector<16x128xi32>
    %113 = arith.andi %108, %112 : vector<16x128xi1>
    %114 = arith.extui %113 : vector<16x128xi1> to vector<16x128xi32>
    %115 = arith.sitofp %114 : vector<16x128xi32> to vector<16x128xf32>
    %c-1_i32_54 = arith.constant -1 : i32
    %116 = vector.broadcast %c-1_i32_54 : i32 to vector<16x128xi32>
    %117 = arith.addi %72, %116 : vector<16x128xi32>
    %c0_i32_55 = arith.constant 0 : i32
    %118 = vector.broadcast %c0_i32_55 : i32 to vector<16x128xi32>
    %119 = arith.cmpi sge, %117, %118 : vector<16x128xi32>
    %c-1_i32_56 = arith.constant -1 : i32
    %120 = vector.broadcast %c-1_i32_56 : i32 to vector<16x128xi32>
    %121 = arith.addi %72, %120 : vector<16x128xi32>
    %c16_i32_57 = arith.constant 16 : i32
    %122 = vector.broadcast %c16_i32_57 : i32 to vector<16x128xi32>
    %123 = arith.cmpi slt, %121, %122 : vector<16x128xi32>
    %124 = arith.andi %119, %123 : vector<16x128xi1>
    %c1_i32_58 = arith.constant 1 : i32
    %125 = vector.broadcast %c1_i32_58 : i32 to vector<16x128xi32>
    %126 = arith.addi %73, %125 : vector<16x128xi32>
    %c0_i32_59 = arith.constant 0 : i32
    %127 = vector.broadcast %c0_i32_59 : i32 to vector<16x128xi32>
    %128 = arith.cmpi sge, %126, %127 : vector<16x128xi32>
    %129 = arith.andi %124, %128 : vector<16x128xi1>
    %c1_i32_60 = arith.constant 1 : i32
    %130 = vector.broadcast %c1_i32_60 : i32 to vector<16x128xi32>
    %131 = arith.addi %73, %130 : vector<16x128xi32>
    %c16_i32_61 = arith.constant 16 : i32
    %132 = vector.broadcast %c16_i32_61 : i32 to vector<16x128xi32>
    %133 = arith.cmpi slt, %131, %132 : vector<16x128xi32>
    %134 = arith.andi %129, %133 : vector<16x128xi1>
    %135 = arith.extui %134 : vector<16x128xi1> to vector<16x128xi32>
    %136 = arith.sitofp %135 : vector<16x128xi32> to vector<16x128xf32>
    %c0_i32_62 = arith.constant 0 : i32
    %137 = vector.broadcast %c0_i32_62 : i32 to vector<16x128xi32>
    %138 = arith.addi %72, %137 : vector<16x128xi32>
    %c0_i32_63 = arith.constant 0 : i32
    %139 = vector.broadcast %c0_i32_63 : i32 to vector<16x128xi32>
    %140 = arith.cmpi sge, %138, %139 : vector<16x128xi32>
    %c0_i32_64 = arith.constant 0 : i32
    %141 = vector.broadcast %c0_i32_64 : i32 to vector<16x128xi32>
    %142 = arith.addi %72, %141 : vector<16x128xi32>
    %c16_i32_65 = arith.constant 16 : i32
    %143 = vector.broadcast %c16_i32_65 : i32 to vector<16x128xi32>
    %144 = arith.cmpi slt, %142, %143 : vector<16x128xi32>
    %145 = arith.andi %140, %144 : vector<16x128xi1>
    %c-1_i32_66 = arith.constant -1 : i32
    %146 = vector.broadcast %c-1_i32_66 : i32 to vector<16x128xi32>
    %147 = arith.addi %73, %146 : vector<16x128xi32>
    %c0_i32_67 = arith.constant 0 : i32
    %148 = vector.broadcast %c0_i32_67 : i32 to vector<16x128xi32>
    %149 = arith.cmpi sge, %147, %148 : vector<16x128xi32>
    %150 = arith.andi %145, %149 : vector<16x128xi1>
    %c-1_i32_68 = arith.constant -1 : i32
    %151 = vector.broadcast %c-1_i32_68 : i32 to vector<16x128xi32>
    %152 = arith.addi %73, %151 : vector<16x128xi32>
    %c16_i32_69 = arith.constant 16 : i32
    %153 = vector.broadcast %c16_i32_69 : i32 to vector<16x128xi32>
    %154 = arith.cmpi slt, %152, %153 : vector<16x128xi32>
    %155 = arith.andi %150, %154 : vector<16x128xi1>
    %156 = arith.extui %155 : vector<16x128xi1> to vector<16x128xi32>
    %157 = arith.sitofp %156 : vector<16x128xi32> to vector<16x128xf32>
    %c0_i32_70 = arith.constant 0 : i32
    %158 = vector.broadcast %c0_i32_70 : i32 to vector<16x128xi32>
    %159 = arith.addi %72, %158 : vector<16x128xi32>
    %c0_i32_71 = arith.constant 0 : i32
    %160 = vector.broadcast %c0_i32_71 : i32 to vector<16x128xi32>
    %161 = arith.cmpi sge, %159, %160 : vector<16x128xi32>
    %c0_i32_72 = arith.constant 0 : i32
    %162 = vector.broadcast %c0_i32_72 : i32 to vector<16x128xi32>
    %163 = arith.addi %72, %162 : vector<16x128xi32>
    %c16_i32_73 = arith.constant 16 : i32
    %164 = vector.broadcast %c16_i32_73 : i32 to vector<16x128xi32>
    %165 = arith.cmpi slt, %163, %164 : vector<16x128xi32>
    %166 = arith.andi %161, %165 : vector<16x128xi1>
    %c1_i32_74 = arith.constant 1 : i32
    %167 = vector.broadcast %c1_i32_74 : i32 to vector<16x128xi32>
    %168 = arith.addi %73, %167 : vector<16x128xi32>
    %c0_i32_75 = arith.constant 0 : i32
    %169 = vector.broadcast %c0_i32_75 : i32 to vector<16x128xi32>
    %170 = arith.cmpi sge, %168, %169 : vector<16x128xi32>
    %171 = arith.andi %166, %170 : vector<16x128xi1>
    %c1_i32_76 = arith.constant 1 : i32
    %172 = vector.broadcast %c1_i32_76 : i32 to vector<16x128xi32>
    %173 = arith.addi %73, %172 : vector<16x128xi32>
    %c16_i32_77 = arith.constant 16 : i32
    %174 = vector.broadcast %c16_i32_77 : i32 to vector<16x128xi32>
    %175 = arith.cmpi slt, %173, %174 : vector<16x128xi32>
    %176 = arith.andi %171, %175 : vector<16x128xi1>
    %177 = arith.extui %176 : vector<16x128xi1> to vector<16x128xi32>
    %178 = arith.sitofp %177 : vector<16x128xi32> to vector<16x128xf32>
    %c1_i32_78 = arith.constant 1 : i32
    %179 = vector.broadcast %c1_i32_78 : i32 to vector<16x128xi32>
    %180 = arith.addi %72, %179 : vector<16x128xi32>
    %c0_i32_79 = arith.constant 0 : i32
    %181 = vector.broadcast %c0_i32_79 : i32 to vector<16x128xi32>
    %182 = arith.cmpi sge, %180, %181 : vector<16x128xi32>
    %c1_i32_80 = arith.constant 1 : i32
    %183 = vector.broadcast %c1_i32_80 : i32 to vector<16x128xi32>
    %184 = arith.addi %72, %183 : vector<16x128xi32>
    %c16_i32_81 = arith.constant 16 : i32
    %185 = vector.broadcast %c16_i32_81 : i32 to vector<16x128xi32>
    %186 = arith.cmpi slt, %184, %185 : vector<16x128xi32>
    %187 = arith.andi %182, %186 : vector<16x128xi1>
    %c-1_i32_82 = arith.constant -1 : i32
    %188 = vector.broadcast %c-1_i32_82 : i32 to vector<16x128xi32>
    %189 = arith.addi %73, %188 : vector<16x128xi32>
    %c0_i32_83 = arith.constant 0 : i32
    %190 = vector.broadcast %c0_i32_83 : i32 to vector<16x128xi32>
    %191 = arith.cmpi sge, %189, %190 : vector<16x128xi32>
    %192 = arith.andi %187, %191 : vector<16x128xi1>
    %c-1_i32_84 = arith.constant -1 : i32
    %193 = vector.broadcast %c-1_i32_84 : i32 to vector<16x128xi32>
    %194 = arith.addi %73, %193 : vector<16x128xi32>
    %c16_i32_85 = arith.constant 16 : i32
    %195 = vector.broadcast %c16_i32_85 : i32 to vector<16x128xi32>
    %196 = arith.cmpi slt, %194, %195 : vector<16x128xi32>
    %197 = arith.andi %192, %196 : vector<16x128xi1>
    %198 = arith.extui %197 : vector<16x128xi1> to vector<16x128xi32>
    %199 = arith.sitofp %198 : vector<16x128xi32> to vector<16x128xf32>
    %c1_i32_86 = arith.constant 1 : i32
    %200 = vector.broadcast %c1_i32_86 : i32 to vector<16x128xi32>
    %201 = arith.addi %72, %200 : vector<16x128xi32>
    %c0_i32_87 = arith.constant 0 : i32
    %202 = vector.broadcast %c0_i32_87 : i32 to vector<16x128xi32>
    %203 = arith.cmpi sge, %201, %202 : vector<16x128xi32>
    %c1_i32_88 = arith.constant 1 : i32
    %204 = vector.broadcast %c1_i32_88 : i32 to vector<16x128xi32>
    %205 = arith.addi %72, %204 : vector<16x128xi32>
    %c16_i32_89 = arith.constant 16 : i32
    %206 = vector.broadcast %c16_i32_89 : i32 to vector<16x128xi32>
    %207 = arith.cmpi slt, %205, %206 : vector<16x128xi32>
    %208 = arith.andi %203, %207 : vector<16x128xi1>
    %c0_i32_90 = arith.constant 0 : i32
    %209 = vector.broadcast %c0_i32_90 : i32 to vector<16x128xi32>
    %210 = arith.addi %73, %209 : vector<16x128xi32>
    %c0_i32_91 = arith.constant 0 : i32
    %211 = vector.broadcast %c0_i32_91 : i32 to vector<16x128xi32>
    %212 = arith.cmpi sge, %210, %211 : vector<16x128xi32>
    %213 = arith.andi %208, %212 : vector<16x128xi1>
    %c0_i32_92 = arith.constant 0 : i32
    %214 = vector.broadcast %c0_i32_92 : i32 to vector<16x128xi32>
    %215 = arith.addi %73, %214 : vector<16x128xi32>
    %c16_i32_93 = arith.constant 16 : i32
    %216 = vector.broadcast %c16_i32_93 : i32 to vector<16x128xi32>
    %217 = arith.cmpi slt, %215, %216 : vector<16x128xi32>
    %218 = arith.andi %213, %217 : vector<16x128xi1>
    %219 = arith.extui %218 : vector<16x128xi1> to vector<16x128xi32>
    %220 = arith.sitofp %219 : vector<16x128xi32> to vector<16x128xf32>
    %c1_i32_94 = arith.constant 1 : i32
    %221 = vector.broadcast %c1_i32_94 : i32 to vector<16x128xi32>
    %222 = arith.addi %72, %221 : vector<16x128xi32>
    %c0_i32_95 = arith.constant 0 : i32
    %223 = vector.broadcast %c0_i32_95 : i32 to vector<16x128xi32>
    %224 = arith.cmpi sge, %222, %223 : vector<16x128xi32>
    %c1_i32_96 = arith.constant 1 : i32
    %225 = vector.broadcast %c1_i32_96 : i32 to vector<16x128xi32>
    %226 = arith.addi %72, %225 : vector<16x128xi32>
    %c16_i32_97 = arith.constant 16 : i32
    %227 = vector.broadcast %c16_i32_97 : i32 to vector<16x128xi32>
    %228 = arith.cmpi slt, %226, %227 : vector<16x128xi32>
    %229 = arith.andi %224, %228 : vector<16x128xi1>
    %c1_i32_98 = arith.constant 1 : i32
    %230 = vector.broadcast %c1_i32_98 : i32 to vector<16x128xi32>
    %231 = arith.addi %73, %230 : vector<16x128xi32>
    %c0_i32_99 = arith.constant 0 : i32
    %232 = vector.broadcast %c0_i32_99 : i32 to vector<16x128xi32>
    %233 = arith.cmpi sge, %231, %232 : vector<16x128xi32>
    %234 = arith.andi %229, %233 : vector<16x128xi1>
    %c1_i32_100 = arith.constant 1 : i32
    %235 = vector.broadcast %c1_i32_100 : i32 to vector<16x128xi32>
    %236 = arith.addi %73, %235 : vector<16x128xi32>
    %c16_i32_101 = arith.constant 16 : i32
    %237 = vector.broadcast %c16_i32_101 : i32 to vector<16x128xi32>
    %238 = arith.cmpi slt, %236, %237 : vector<16x128xi32>
    %239 = arith.andi %234, %238 : vector<16x128xi1>
    %240 = arith.extui %239 : vector<16x128xi1> to vector<16x128xi32>
    %241 = arith.sitofp %240 : vector<16x128xi32> to vector<16x128xf32>
    %c0_102 = arith.constant 0 : index
    %c0_103 = arith.constant 0 : index
    %242 = vector.load %arg3[%c0_102, %c0_103] : memref<464x216xbf16, #tpu.memory_space<vmem>>, vector<144x216xbf16>
    %cst_104 = arith.constant dense<0.000000e+00> : vector<144x128xf32>
    %243 = tpu.matmul %242, %46, %cst_104 {dimension_numbers = #tpu.dot_dimension_numbers<[1], [0], [0], [1], [0, 0, 1, 1], [], []>} : vector<144x216xbf16>, vector<216x128xbf16>, vector<144x128xf32> -> vector<144x128xf32>
    %cst_105 = arith.constant 0.000000e+00 : f32
    %244 = vector.broadcast %cst_105 : f32 to vector<16x128xf32>
    %245 = vector.extract_strided_slice %243 {offsets = [0, 0], sizes = [16, 128], strides = [1, 1]} : vector<144x128xf32> to vector<16x128xf32>
    %c0_106 = arith.constant 0 : index
    %246 = memref.load %arg4[%c0_106] : memref<29xf32, #tpu.memory_space<smem>>
    %247 = vector.broadcast %246 : f32 to vector<16x128xf32>
    %248 = arith.addf %245, %247 : vector<16x128xf32>
    %249 = arith.mulf %248, %94 : vector<16x128xf32>
    %250 = math.absf %249 : vector<16x128xf32>
    %251 = arith.addf %244, %250 : vector<16x128xf32>
    %252 = vector.extract_strided_slice %243 {offsets = [16, 0], sizes = [16, 128], strides = [1, 1]} : vector<144x128xf32> to vector<16x128xf32>
    %c1 = arith.constant 1 : index
    %253 = memref.load %arg4[%c1] : memref<29xf32, #tpu.memory_space<smem>>
    %254 = vector.broadcast %253 : f32 to vector<16x128xf32>
    %255 = arith.addf %252, %254 : vector<16x128xf32>
    %256 = arith.mulf %255, %115 : vector<16x128xf32>
    %257 = math.absf %256 : vector<16x128xf32>
    %258 = arith.addf %251, %257 : vector<16x128xf32>
    %259 = vector.extract_strided_slice %243 {offsets = [32, 0], sizes = [16, 128], strides = [1, 1]} : vector<144x128xf32> to vector<16x128xf32>
    %c2 = arith.constant 2 : index
    %260 = memref.load %arg4[%c2] : memref<29xf32, #tpu.memory_space<smem>>
    %261 = vector.broadcast %260 : f32 to vector<16x128xf32>
    %262 = arith.addf %259, %261 : vector<16x128xf32>
    %263 = arith.mulf %262, %136 : vector<16x128xf32>
    %264 = math.absf %263 : vector<16x128xf32>
    %265 = arith.addf %258, %264 : vector<16x128xf32>
    %266 = vector.extract_strided_slice %243 {offsets = [48, 0], sizes = [16, 128], strides = [1, 1]} : vector<144x128xf32> to vector<16x128xf32>
    %c3 = arith.constant 3 : index
    %267 = memref.load %arg4[%c3] : memref<29xf32, #tpu.memory_space<smem>>
    %268 = vector.broadcast %267 : f32 to vector<16x128xf32>
    %269 = arith.addf %266, %268 : vector<16x128xf32>
    %270 = arith.mulf %269, %157 : vector<16x128xf32>
    %271 = math.absf %270 : vector<16x128xf32>
    %272 = arith.addf %265, %271 : vector<16x128xf32>
    %273 = vector.extract_strided_slice %243 {offsets = [64, 0], sizes = [16, 128], strides = [1, 1]} : vector<144x128xf32> to vector<16x128xf32>
    %c4 = arith.constant 4 : index
    %274 = memref.load %arg4[%c4] : memref<29xf32, #tpu.memory_space<smem>>
    %275 = vector.broadcast %274 : f32 to vector<16x128xf32>
    %276 = arith.addf %273, %275 : vector<16x128xf32>
    %277 = math.absf %276 : vector<16x128xf32>
    %278 = arith.addf %272, %277 : vector<16x128xf32>
    %279 = vector.extract_strided_slice %243 {offsets = [80, 0], sizes = [16, 128], strides = [1, 1]} : vector<144x128xf32> to vector<16x128xf32>
    %c5 = arith.constant 5 : index
    %280 = memref.load %arg4[%c5] : memref<29xf32, #tpu.memory_space<smem>>
    %281 = vector.broadcast %280 : f32 to vector<16x128xf32>
    %282 = arith.addf %279, %281 : vector<16x128xf32>
    %283 = arith.mulf %282, %178 : vector<16x128xf32>
    %284 = math.absf %283 : vector<16x128xf32>
    %285 = arith.addf %278, %284 : vector<16x128xf32>
    %286 = vector.extract_strided_slice %243 {offsets = [96, 0], sizes = [16, 128], strides = [1, 1]} : vector<144x128xf32> to vector<16x128xf32>
    %c6 = arith.constant 6 : index
    %287 = memref.load %arg4[%c6] : memref<29xf32, #tpu.memory_space<smem>>
    %288 = vector.broadcast %287 : f32 to vector<16x128xf32>
    %289 = arith.addf %286, %288 : vector<16x128xf32>
    %290 = arith.mulf %289, %199 : vector<16x128xf32>
    %291 = math.absf %290 : vector<16x128xf32>
    %292 = arith.addf %285, %291 : vector<16x128xf32>
    %293 = vector.extract_strided_slice %243 {offsets = [112, 0], sizes = [16, 128], strides = [1, 1]} : vector<144x128xf32> to vector<16x128xf32>
    %c7 = arith.constant 7 : index
    %294 = memref.load %arg4[%c7] : memref<29xf32, #tpu.memory_space<smem>>
    %295 = vector.broadcast %294 : f32 to vector<16x128xf32>
    %296 = arith.addf %293, %295 : vector<16x128xf32>
    %297 = arith.mulf %296, %220 : vector<16x128xf32>
    %298 = math.absf %297 : vector<16x128xf32>
    %299 = arith.addf %292, %298 : vector<16x128xf32>
    %300 = vector.extract_strided_slice %243 {offsets = [128, 0], sizes = [16, 128], strides = [1, 1]} : vector<144x128xf32> to vector<16x128xf32>
    %c8 = arith.constant 8 : index
    %301 = memref.load %arg4[%c8] : memref<29xf32, #tpu.memory_space<smem>>
    %302 = vector.broadcast %301 : f32 to vector<16x128xf32>
    %303 = arith.addf %300, %302 : vector<16x128xf32>
    %304 = arith.mulf %303, %241 : vector<16x128xf32>
    %305 = math.absf %304 : vector<16x128xf32>
    %306 = arith.addf %299, %305 : vector<16x128xf32>
    %cst_107 = arith.constant 9.99999997E-7 : f32
    %307 = vector.broadcast %cst_107 : f32 to vector<16x128xf32>
    %308 = arith.addf %306, %307 : vector<16x128xf32>
    %309 = tpu.reciprocal %308 {approx = true} : vector<16x128xf32> -> vector<16x128xf32>
    %c1_i32_108 = arith.constant 1 : i32
    %310 = tpu.dynamic_rotate %61 by %c1_i32_108 dim 0 : vector<16x128xf32>, i32 -> vector<16x128xf32>
    %c15_i32 = arith.constant 15 : i32
    %311 = tpu.dynamic_rotate %61 by %c15_i32 dim 0 : vector<16x128xf32>, i32 -> vector<16x128xf32>
    %cst_109 = arith.constant 0.000000e+00 : f32
    %312 = vector.broadcast %cst_109 : f32 to vector<16x128xf32>
    %c1_i32_110 = arith.constant 1 : i32
    %313 = tpu.dynamic_rotate %310 by %c1_i32_110 dim 1 : vector<16x128xf32>, i32 -> vector<16x128xf32>
    %314 = arith.mulf %249, %309 : vector<16x128xf32>
    %315 = arith.mulf %314, %313 : vector<16x128xf32>
    %316 = arith.addf %312, %315 : vector<16x128xf32>
    %317 = arith.mulf %256, %309 : vector<16x128xf32>
    %318 = arith.mulf %317, %310 : vector<16x128xf32>
    %319 = arith.addf %316, %318 : vector<16x128xf32>
    %c127_i32_111 = arith.constant 127 : i32
    %320 = tpu.dynamic_rotate %310 by %c127_i32_111 dim 1 : vector<16x128xf32>, i32 -> vector<16x128xf32>
    %321 = arith.mulf %263, %309 : vector<16x128xf32>
    %322 = arith.mulf %321, %320 : vector<16x128xf32>
    %323 = arith.addf %319, %322 : vector<16x128xf32>
    %c1_i32_112 = arith.constant 1 : i32
    %324 = tpu.dynamic_rotate %61 by %c1_i32_112 dim 1 : vector<16x128xf32>, i32 -> vector<16x128xf32>
    %325 = arith.mulf %270, %309 : vector<16x128xf32>
    %326 = arith.mulf %325, %324 : vector<16x128xf32>
    %327 = arith.addf %323, %326 : vector<16x128xf32>
    %328 = arith.mulf %276, %309 : vector<16x128xf32>
    %329 = arith.mulf %328, %61 : vector<16x128xf32>
    %330 = arith.addf %327, %329 : vector<16x128xf32>
    %c127_i32_113 = arith.constant 127 : i32
    %331 = tpu.dynamic_rotate %61 by %c127_i32_113 dim 1 : vector<16x128xf32>, i32 -> vector<16x128xf32>
    %332 = arith.mulf %283, %309 : vector<16x128xf32>
    %333 = arith.mulf %332, %331 : vector<16x128xf32>
    %334 = arith.addf %330, %333 : vector<16x128xf32>
    %c1_i32_114 = arith.constant 1 : i32
    %335 = tpu.dynamic_rotate %311 by %c1_i32_114 dim 1 : vector<16x128xf32>, i32 -> vector<16x128xf32>
    %336 = arith.mulf %290, %309 : vector<16x128xf32>
    %337 = arith.mulf %336, %335 : vector<16x128xf32>
    %338 = arith.addf %334, %337 : vector<16x128xf32>
    %339 = arith.mulf %297, %309 : vector<16x128xf32>
    %340 = arith.mulf %339, %311 : vector<16x128xf32>
    %341 = arith.addf %338, %340 : vector<16x128xf32>
    %c127_i32_115 = arith.constant 127 : i32
    %342 = tpu.dynamic_rotate %311 by %c127_i32_115 dim 1 : vector<16x128xf32>, i32 -> vector<16x128xf32>
    %343 = arith.mulf %304, %309 : vector<16x128xf32>
    %344 = arith.mulf %343, %342 : vector<16x128xf32>
    %345 = arith.addf %341, %344 : vector<16x128xf32>
    %346 = arith.subf %62, %345 : vector<16x128xf32>
    %347 = arith.mulf %67, %346 : vector<16x128xf32>
    %348 = arith.addf %345, %347 : vector<16x128xf32>
    %c144 = arith.constant 144 : index
    %c0_116 = arith.constant 0 : index
    %349 = vector.load %arg3[%c144, %c0_116] : memref<464x216xbf16, #tpu.memory_space<vmem>>, vector<144x216xbf16>
    %cst_117 = arith.constant dense<0.000000e+00> : vector<144x128xf32>
    %350 = tpu.matmul %349, %46, %cst_117 {dimension_numbers = #tpu.dot_dimension_numbers<[1], [0], [0], [1], [0, 0, 1, 1], [], []>} : vector<144x216xbf16>, vector<216x128xbf16>, vector<144x128xf32> -> vector<144x128xf32>
    %cst_118 = arith.constant 0.000000e+00 : f32
    %351 = vector.broadcast %cst_118 : f32 to vector<16x128xf32>
    %352 = vector.extract_strided_slice %350 {offsets = [0, 0], sizes = [16, 128], strides = [1, 1]} : vector<144x128xf32> to vector<16x128xf32>
    %c9 = arith.constant 9 : index
    %353 = memref.load %arg4[%c9] : memref<29xf32, #tpu.memory_space<smem>>
    %354 = vector.broadcast %353 : f32 to vector<16x128xf32>
    %355 = arith.addf %352, %354 : vector<16x128xf32>
    %356 = arith.mulf %355, %94 : vector<16x128xf32>
    %357 = math.absf %356 : vector<16x128xf32>
    %358 = arith.addf %351, %357 : vector<16x128xf32>
    %359 = vector.extract_strided_slice %350 {offsets = [16, 0], sizes = [16, 128], strides = [1, 1]} : vector<144x128xf32> to vector<16x128xf32>
    %c10 = arith.constant 10 : index
    %360 = memref.load %arg4[%c10] : memref<29xf32, #tpu.memory_space<smem>>
    %361 = vector.broadcast %360 : f32 to vector<16x128xf32>
    %362 = arith.addf %359, %361 : vector<16x128xf32>
    %363 = arith.mulf %362, %115 : vector<16x128xf32>
    %364 = math.absf %363 : vector<16x128xf32>
    %365 = arith.addf %358, %364 : vector<16x128xf32>
    %366 = vector.extract_strided_slice %350 {offsets = [32, 0], sizes = [16, 128], strides = [1, 1]} : vector<144x128xf32> to vector<16x128xf32>
    %c11 = arith.constant 11 : index
    %367 = memref.load %arg4[%c11] : memref<29xf32, #tpu.memory_space<smem>>
    %368 = vector.broadcast %367 : f32 to vector<16x128xf32>
    %369 = arith.addf %366, %368 : vector<16x128xf32>
    %370 = arith.mulf %369, %136 : vector<16x128xf32>
    %371 = math.absf %370 : vector<16x128xf32>
    %372 = arith.addf %365, %371 : vector<16x128xf32>
    %373 = vector.extract_strided_slice %350 {offsets = [48, 0], sizes = [16, 128], strides = [1, 1]} : vector<144x128xf32> to vector<16x128xf32>
    %c12 = arith.constant 12 : index
    %374 = memref.load %arg4[%c12] : memref<29xf32, #tpu.memory_space<smem>>
    %375 = vector.broadcast %374 : f32 to vector<16x128xf32>
    %376 = arith.addf %373, %375 : vector<16x128xf32>
    %377 = arith.mulf %376, %157 : vector<16x128xf32>
    %378 = math.absf %377 : vector<16x128xf32>
    %379 = arith.addf %372, %378 : vector<16x128xf32>
    %380 = vector.extract_strided_slice %350 {offsets = [64, 0], sizes = [16, 128], strides = [1, 1]} : vector<144x128xf32> to vector<16x128xf32>
    %c13 = arith.constant 13 : index
    %381 = memref.load %arg4[%c13] : memref<29xf32, #tpu.memory_space<smem>>
    %382 = vector.broadcast %381 : f32 to vector<16x128xf32>
    %383 = arith.addf %380, %382 : vector<16x128xf32>
    %384 = math.absf %383 : vector<16x128xf32>
    %385 = arith.addf %379, %384 : vector<16x128xf32>
    %386 = vector.extract_strided_slice %350 {offsets = [80, 0], sizes = [16, 128], strides = [1, 1]} : vector<144x128xf32> to vector<16x128xf32>
    %c14 = arith.constant 14 : index
    %387 = memref.load %arg4[%c14] : memref<29xf32, #tpu.memory_space<smem>>
    %388 = vector.broadcast %387 : f32 to vector<16x128xf32>
    %389 = arith.addf %386, %388 : vector<16x128xf32>
    %390 = arith.mulf %389, %178 : vector<16x128xf32>
    %391 = math.absf %390 : vector<16x128xf32>
    %392 = arith.addf %385, %391 : vector<16x128xf32>
    %393 = vector.extract_strided_slice %350 {offsets = [96, 0], sizes = [16, 128], strides = [1, 1]} : vector<144x128xf32> to vector<16x128xf32>
    %c15 = arith.constant 15 : index
    %394 = memref.load %arg4[%c15] : memref<29xf32, #tpu.memory_space<smem>>
    %395 = vector.broadcast %394 : f32 to vector<16x128xf32>
    %396 = arith.addf %393, %395 : vector<16x128xf32>
    %397 = arith.mulf %396, %199 : vector<16x128xf32>
    %398 = math.absf %397 : vector<16x128xf32>
    %399 = arith.addf %392, %398 : vector<16x128xf32>
    %400 = vector.extract_strided_slice %350 {offsets = [112, 0], sizes = [16, 128], strides = [1, 1]} : vector<144x128xf32> to vector<16x128xf32>
    %c16 = arith.constant 16 : index
    %401 = memref.load %arg4[%c16] : memref<29xf32, #tpu.memory_space<smem>>
    %402 = vector.broadcast %401 : f32 to vector<16x128xf32>
    %403 = arith.addf %400, %402 : vector<16x128xf32>
    %404 = arith.mulf %403, %220 : vector<16x128xf32>
    %405 = math.absf %404 : vector<16x128xf32>
    %406 = arith.addf %399, %405 : vector<16x128xf32>
    %407 = vector.extract_strided_slice %350 {offsets = [128, 0], sizes = [16, 128], strides = [1, 1]} : vector<144x128xf32> to vector<16x128xf32>
    %c17 = arith.constant 17 : index
    %408 = memref.load %arg4[%c17] : memref<29xf32, #tpu.memory_space<smem>>
    %409 = vector.broadcast %408 : f32 to vector<16x128xf32>
    %410 = arith.addf %407, %409 : vector<16x128xf32>
    %411 = arith.mulf %410, %241 : vector<16x128xf32>
    %412 = math.absf %411 : vector<16x128xf32>
    %413 = arith.addf %406, %412 : vector<16x128xf32>
    %cst_119 = arith.constant 9.99999997E-7 : f32
    %414 = vector.broadcast %cst_119 : f32 to vector<16x128xf32>
    %415 = arith.addf %413, %414 : vector<16x128xf32>
    %416 = tpu.reciprocal %415 {approx = true} : vector<16x128xf32> -> vector<16x128xf32>
    %c1_i32_120 = arith.constant 1 : i32
    %417 = tpu.dynamic_rotate %348 by %c1_i32_120 dim 0 : vector<16x128xf32>, i32 -> vector<16x128xf32>
    %c15_i32_121 = arith.constant 15 : i32
    %418 = tpu.dynamic_rotate %348 by %c15_i32_121 dim 0 : vector<16x128xf32>, i32 -> vector<16x128xf32>
    %cst_122 = arith.constant 0.000000e+00 : f32
    %419 = vector.broadcast %cst_122 : f32 to vector<16x128xf32>
    %c1_i32_123 = arith.constant 1 : i32
    %420 = tpu.dynamic_rotate %417 by %c1_i32_123 dim 1 : vector<16x128xf32>, i32 -> vector<16x128xf32>
    %421 = arith.mulf %356, %416 : vector<16x128xf32>
    %422 = arith.mulf %421, %420 : vector<16x128xf32>
    %423 = arith.addf %419, %422 : vector<16x128xf32>
    %424 = arith.mulf %363, %416 : vector<16x128xf32>
    %425 = arith.mulf %424, %417 : vector<16x128xf32>
    %426 = arith.addf %423, %425 : vector<16x128xf32>
    %c127_i32_124 = arith.constant 127 : i32
    %427 = tpu.dynamic_rotate %417 by %c127_i32_124 dim 1 : vector<16x128xf32>, i32 -> vector<16x128xf32>
    %428 = arith.mulf %370, %416 : vector<16x128xf32>
    %429 = arith.mulf %428, %427 : vector<16x128xf32>
    %430 = arith.addf %426, %429 : vector<16x128xf32>
    %c1_i32_125 = arith.constant 1 : i32
    %431 = tpu.dynamic_rotate %348 by %c1_i32_125 dim 1 : vector<16x128xf32>, i32 -> vector<16x128xf32>
    %432 = arith.mulf %377, %416 : vector<16x128xf32>
    %433 = arith.mulf %432, %431 : vector<16x128xf32>
    %434 = arith.addf %430, %433 : vector<16x128xf32>
    %435 = arith.mulf %383, %416 : vector<16x128xf32>
    %436 = arith.mulf %435, %348 : vector<16x128xf32>
    %437 = arith.addf %434, %436 : vector<16x128xf32>
    %c127_i32_126 = arith.constant 127 : i32
    %438 = tpu.dynamic_rotate %348 by %c127_i32_126 dim 1 : vector<16x128xf32>, i32 -> vector<16x128xf32>
    %439 = arith.mulf %390, %416 : vector<16x128xf32>
    %440 = arith.mulf %439, %438 : vector<16x128xf32>
    %441 = arith.addf %437, %440 : vector<16x128xf32>
    %c1_i32_127 = arith.constant 1 : i32
    %442 = tpu.dynamic_rotate %418 by %c1_i32_127 dim 1 : vector<16x128xf32>, i32 -> vector<16x128xf32>
    %443 = arith.mulf %397, %416 : vector<16x128xf32>
    %444 = arith.mulf %443, %442 : vector<16x128xf32>
    %445 = arith.addf %441, %444 : vector<16x128xf32>
    %446 = arith.mulf %404, %416 : vector<16x128xf32>
    %447 = arith.mulf %446, %418 : vector<16x128xf32>
    %448 = arith.addf %445, %447 : vector<16x128xf32>
    %c127_i32_128 = arith.constant 127 : i32
    %449 = tpu.dynamic_rotate %418 by %c127_i32_128 dim 1 : vector<16x128xf32>, i32 -> vector<16x128xf32>
    %450 = arith.mulf %411, %416 : vector<16x128xf32>
    %451 = arith.mulf %450, %449 : vector<16x128xf32>
    %452 = arith.addf %448, %451 : vector<16x128xf32>
    %453 = arith.subf %62, %452 : vector<16x128xf32>
    %454 = arith.mulf %67, %453 : vector<16x128xf32>
    %455 = arith.addf %452, %454 : vector<16x128xf32>
    %c288 = arith.constant 288 : index
    %c0_129 = arith.constant 0 : index
    %456 = vector.load %arg3[%c288, %c0_129] : memref<464x216xbf16, #tpu.memory_space<vmem>>, vector<144x216xbf16>
    %cst_130 = arith.constant dense<0.000000e+00> : vector<144x128xf32>
    %457 = tpu.matmul %456, %46, %cst_130 {dimension_numbers = #tpu.dot_dimension_numbers<[1], [0], [0], [1], [0, 0, 1, 1], [], []>} : vector<144x216xbf16>, vector<216x128xbf16>, vector<144x128xf32> -> vector<144x128xf32>
    %cst_131 = arith.constant 0.000000e+00 : f32
    %458 = vector.broadcast %cst_131 : f32 to vector<16x128xf32>
    %459 = vector.extract_strided_slice %457 {offsets = [0, 0], sizes = [16, 128], strides = [1, 1]} : vector<144x128xf32> to vector<16x128xf32>
    %c18 = arith.constant 18 : index
    %460 = memref.load %arg4[%c18] : memref<29xf32, #tpu.memory_space<smem>>
    %461 = vector.broadcast %460 : f32 to vector<16x128xf32>
    %462 = arith.addf %459, %461 : vector<16x128xf32>
    %463 = arith.mulf %462, %94 : vector<16x128xf32>
    %464 = math.absf %463 : vector<16x128xf32>
    %465 = arith.addf %458, %464 : vector<16x128xf32>
    %466 = vector.extract_strided_slice %457 {offsets = [16, 0], sizes = [16, 128], strides = [1, 1]} : vector<144x128xf32> to vector<16x128xf32>
    %c19 = arith.constant 19 : index
    %467 = memref.load %arg4[%c19] : memref<29xf32, #tpu.memory_space<smem>>
    %468 = vector.broadcast %467 : f32 to vector<16x128xf32>
    %469 = arith.addf %466, %468 : vector<16x128xf32>
    %470 = arith.mulf %469, %115 : vector<16x128xf32>
    %471 = math.absf %470 : vector<16x128xf32>
    %472 = arith.addf %465, %471 : vector<16x128xf32>
    %473 = vector.extract_strided_slice %457 {offsets = [32, 0], sizes = [16, 128], strides = [1, 1]} : vector<144x128xf32> to vector<16x128xf32>
    %c20 = arith.constant 20 : index
    %474 = memref.load %arg4[%c20] : memref<29xf32, #tpu.memory_space<smem>>
    %475 = vector.broadcast %474 : f32 to vector<16x128xf32>
    %476 = arith.addf %473, %475 : vector<16x128xf32>
    %477 = arith.mulf %476, %136 : vector<16x128xf32>
    %478 = math.absf %477 : vector<16x128xf32>
    %479 = arith.addf %472, %478 : vector<16x128xf32>
    %480 = vector.extract_strided_slice %457 {offsets = [48, 0], sizes = [16, 128], strides = [1, 1]} : vector<144x128xf32> to vector<16x128xf32>
    %c21 = arith.constant 21 : index
    %481 = memref.load %arg4[%c21] : memref<29xf32, #tpu.memory_space<smem>>
    %482 = vector.broadcast %481 : f32 to vector<16x128xf32>
    %483 = arith.addf %480, %482 : vector<16x128xf32>
    %484 = arith.mulf %483, %157 : vector<16x128xf32>
    %485 = math.absf %484 : vector<16x128xf32>
    %486 = arith.addf %479, %485 : vector<16x128xf32>
    %487 = vector.extract_strided_slice %457 {offsets = [64, 0], sizes = [16, 128], strides = [1, 1]} : vector<144x128xf32> to vector<16x128xf32>
    %c22 = arith.constant 22 : index
    %488 = memref.load %arg4[%c22] : memref<29xf32, #tpu.memory_space<smem>>
    %489 = vector.broadcast %488 : f32 to vector<16x128xf32>
    %490 = arith.addf %487, %489 : vector<16x128xf32>
    %491 = math.absf %490 : vector<16x128xf32>
    %492 = arith.addf %486, %491 : vector<16x128xf32>
    %493 = vector.extract_strided_slice %457 {offsets = [80, 0], sizes = [16, 128], strides = [1, 1]} : vector<144x128xf32> to vector<16x128xf32>
    %c23 = arith.constant 23 : index
    %494 = memref.load %arg4[%c23] : memref<29xf32, #tpu.memory_space<smem>>
    %495 = vector.broadcast %494 : f32 to vector<16x128xf32>
    %496 = arith.addf %493, %495 : vector<16x128xf32>
    %497 = arith.mulf %496, %178 : vector<16x128xf32>
    %498 = math.absf %497 : vector<16x128xf32>
    %499 = arith.addf %492, %498 : vector<16x128xf32>
    %500 = vector.extract_strided_slice %457 {offsets = [96, 0], sizes = [16, 128], strides = [1, 1]} : vector<144x128xf32> to vector<16x128xf32>
    %c24 = arith.constant 24 : index
    %501 = memref.load %arg4[%c24] : memref<29xf32, #tpu.memory_space<smem>>
    %502 = vector.broadcast %501 : f32 to vector<16x128xf32>
    %503 = arith.addf %500, %502 : vector<16x128xf32>
    %504 = arith.mulf %503, %199 : vector<16x128xf32>
    %505 = math.absf %504 : vector<16x128xf32>
    %506 = arith.addf %499, %505 : vector<16x128xf32>
    %507 = vector.extract_strided_slice %457 {offsets = [112, 0], sizes = [16, 128], strides = [1, 1]} : vector<144x128xf32> to vector<16x128xf32>
    %c25 = arith.constant 25 : index
    %508 = memref.load %arg4[%c25] : memref<29xf32, #tpu.memory_space<smem>>
    %509 = vector.broadcast %508 : f32 to vector<16x128xf32>
    %510 = arith.addf %507, %509 : vector<16x128xf32>
    %511 = arith.mulf %510, %220 : vector<16x128xf32>
    %512 = math.absf %511 : vector<16x128xf32>
    %513 = arith.addf %506, %512 : vector<16x128xf32>
    %514 = vector.extract_strided_slice %457 {offsets = [128, 0], sizes = [16, 128], strides = [1, 1]} : vector<144x128xf32> to vector<16x128xf32>
    %c26 = arith.constant 26 : index
    %515 = memref.load %arg4[%c26] : memref<29xf32, #tpu.memory_space<smem>>
    %516 = vector.broadcast %515 : f32 to vector<16x128xf32>
    %517 = arith.addf %514, %516 : vector<16x128xf32>
    %518 = arith.mulf %517, %241 : vector<16x128xf32>
    %519 = math.absf %518 : vector<16x128xf32>
    %520 = arith.addf %513, %519 : vector<16x128xf32>
    %cst_132 = arith.constant 9.99999997E-7 : f32
    %521 = vector.broadcast %cst_132 : f32 to vector<16x128xf32>
    %522 = arith.addf %520, %521 : vector<16x128xf32>
    %523 = tpu.reciprocal %522 {approx = true} : vector<16x128xf32> -> vector<16x128xf32>
    %c1_i32_133 = arith.constant 1 : i32
    %524 = tpu.dynamic_rotate %455 by %c1_i32_133 dim 0 : vector<16x128xf32>, i32 -> vector<16x128xf32>
    %c15_i32_134 = arith.constant 15 : i32
    %525 = tpu.dynamic_rotate %455 by %c15_i32_134 dim 0 : vector<16x128xf32>, i32 -> vector<16x128xf32>
    %cst_135 = arith.constant 0.000000e+00 : f32
    %526 = vector.broadcast %cst_135 : f32 to vector<16x128xf32>
    %c1_i32_136 = arith.constant 1 : i32
    %527 = tpu.dynamic_rotate %524 by %c1_i32_136 dim 1 : vector<16x128xf32>, i32 -> vector<16x128xf32>
    %528 = arith.mulf %463, %523 : vector<16x128xf32>
    %529 = arith.mulf %528, %527 : vector<16x128xf32>
    %530 = arith.addf %526, %529 : vector<16x128xf32>
    %531 = arith.mulf %470, %523 : vector<16x128xf32>
    %532 = arith.mulf %531, %524 : vector<16x128xf32>
    %533 = arith.addf %530, %532 : vector<16x128xf32>
    %c127_i32_137 = arith.constant 127 : i32
    %534 = tpu.dynamic_rotate %524 by %c127_i32_137 dim 1 : vector<16x128xf32>, i32 -> vector<16x128xf32>
    %535 = arith.mulf %477, %523 : vector<16x128xf32>
    %536 = arith.mulf %535, %534 : vector<16x128xf32>
    %537 = arith.addf %533, %536 : vector<16x128xf32>
    %c1_i32_138 = arith.constant 1 : i32
    %538 = tpu.dynamic_rotate %455 by %c1_i32_138 dim 1 : vector<16x128xf32>, i32 -> vector<16x128xf32>
    %539 = arith.mulf %484, %523 : vector<16x128xf32>
    %540 = arith.mulf %539, %538 : vector<16x128xf32>
    %541 = arith.addf %537, %540 : vector<16x128xf32>
    %542 = arith.mulf %490, %523 : vector<16x128xf32>
    %543 = arith.mulf %542, %455 : vector<16x128xf32>
    %544 = arith.addf %541, %543 : vector<16x128xf32>
    %c127_i32_139 = arith.constant 127 : i32
    %545 = tpu.dynamic_rotate %455 by %c127_i32_139 dim 1 : vector<16x128xf32>, i32 -> vector<16x128xf32>
    %546 = arith.mulf %497, %523 : vector<16x128xf32>
    %547 = arith.mulf %546, %545 : vector<16x128xf32>
    %548 = arith.addf %544, %547 : vector<16x128xf32>
    %c1_i32_140 = arith.constant 1 : i32
    %549 = tpu.dynamic_rotate %525 by %c1_i32_140 dim 1 : vector<16x128xf32>, i32 -> vector<16x128xf32>
    %550 = arith.mulf %504, %523 : vector<16x128xf32>
    %551 = arith.mulf %550, %549 : vector<16x128xf32>
    %552 = arith.addf %548, %551 : vector<16x128xf32>
    %553 = arith.mulf %511, %523 : vector<16x128xf32>
    %554 = arith.mulf %553, %525 : vector<16x128xf32>
    %555 = arith.addf %552, %554 : vector<16x128xf32>
    %c127_i32_141 = arith.constant 127 : i32
    %556 = tpu.dynamic_rotate %525 by %c127_i32_141 dim 1 : vector<16x128xf32>, i32 -> vector<16x128xf32>
    %557 = arith.mulf %518, %523 : vector<16x128xf32>
    %558 = arith.mulf %557, %556 : vector<16x128xf32>
    %559 = arith.addf %555, %558 : vector<16x128xf32>
    %560 = arith.subf %62, %559 : vector<16x128xf32>
    %561 = arith.mulf %67, %560 : vector<16x128xf32>
    %562 = arith.addf %559, %561 : vector<16x128xf32>
    %563 = vector.extract_strided_slice %562 {offsets = [4, 0], sizes = [8, 128], strides = [1, 1]} : vector<16x128xf32> to vector<8x128xf32>
    %564 = vector.shape_cast %563 : vector<8x128xf32> to vector<1x8x128xf32>
    %c0_142 = arith.constant 0 : index
    %c0_143 = arith.constant 0 : index
    %c0_144 = arith.constant 0 : index
    %565 = vector.load %arg5[%c0_142, %c0_143, %c0_144] : memref<1x8x128xf32, #tpu.memory_space<vmem>>, vector<1x8x128xf32>
    tpu.vector_store %arg5[%c0_142, %c0_143, %c0_144], %564 {strides = array<i32>} : memref<1x8x128xf32, #tpu.memory_space<vmem>>, vector<1x8x128xf32>,
    return
  }
  func.func @transform_1(%arg0: i32, %arg1: i32) -> (i32, i32) {
    %c0_i32 = arith.constant 0 : i32
    %c0_i32_0 = arith.constant 0 : i32
    %c0_i32_1 = arith.constant 0 : i32
    return %c0_i32, %c0_i32_0 : i32, i32
  }
  func.func @transform_2(%arg0: i32, %arg1: i32) -> i32 {
    %c0_i32 = arith.constant 0 : i32
    %c0_i32_0 = arith.constant 0 : i32
    return %c0_i32 : i32
  }
  func.func @transform_3(%arg0: i32, %arg1: i32) -> (i32, i32, i32) {
    %c0_i32 = arith.constant 0 : i32
    %c0_i32_0 = arith.constant 0 : i32
    return %arg0, %arg1, %c0_i32 : i32, i32, i32
  }
}

</mosaic_0001>

<bundles_post_ra>
// kernel: dyspn_forward.1
= control target key start
LH: loop header
LB: loop body
LE: loop exit
PB: predicated region body
PF: predicated region fallthrough
CT: control target
= control target key end

     0   :  { %8 = vsyncpa [#allocation5], 0  ;;  %s2620_s12 = smov 0   ;;  %s2622_s13 = smov 0   ;;  %s3999_s0 = inlined_call_operand.vmem [shape: f32[2,4,26,128], index: 0, kind: input, shape index: {}]   ;;  %s4000_s1 = inlined_call_operand.vmem [shape: bf16[464,216], index: 1, kind: input, shape index: {}]   ;;  %s4001_s2 = inlined_call_operand.vmem [shape: f32[29], index: 2, kind: input, shape index: {}]   ;;  %s4002_s3 = inlined_call_operand.vmem [shape: f32[2,16,128], index: 3, kind: output, shape index: {}]  }
   0x1   :  { %s2624_s14 = smov 0   ;;  %s2626_s15 = smov 0  }
   0x2   :  { %s2628_s16 = smov 0  }
   0x3 LB: > { %s2124_s17 = sadd.s32 4294967295, %s2593_s16   ;;  %s23_s18 = sadd.s32 1, %s2585_s14  ;;  %s2593_s16 = sphi %s2628_s16, %s14_s16   ;;  %s2589_s15 = sphi %s2626_s15, %s4153_s15   ;;  %s2585_s14 = sphi %s2624_s14, %s4152_s14   ;;  %s2581_s13 = sphi %s2622_s13, %s4151_s13   ;;  %s2577_s12 = sphi %s2620_s12, %s4150_s12  }
   0x4   : > { %p24_p0 = scmp.ge.s32.totalorder %s23_s18, 2  ;;  %s26_s19 = sadd.s32 1, %s2589_s15 }
   0x5   : > { %p2126_p1 = scmp.ge.s32.totalorder %s2593_s16, 1  ;;  %p101_p2 = scmp.lt.s32.totalorder %s2593_s16, 5 }
   0x6   : > { %s4155_s18 = smov (%p24_p0, %s23_s18), 0  ;;  %s4157_s19 = smov (!%p24_p0, %s26_s19), %s2589_s15 }
   0x7   : > { %p2653_p3 = pnand %p2126_p1, %p101_p2  ;;  %p28_p4 = scmp.ge.s32.totalorder %s4157_s19, 2 }
   0x8   : > { %p2657_p5 = scmp.eq.s32.totalorder %s2124_s17, 0  ;;  %s117_s24 = sshll.u32 %s4001_s2, 4  ;;  %s118_s24 = int_to_ptr.vmem [resolvable:$true] %s117_s24 }
   0x9   : > { %p2330_p6 = pneg %p2653_p3  ;;  %s4159_s19 = smov (%p28_p4, %s4157_s19), 0 }
   0xa   : > { %s2528_s25 = scalar_lea.vmem %s118_s24, 16  ;;  %p2536_p12 = scmp.lt.s32.totalorder %s118_s24, %s118_s24 }
   0xb   : > { %p2331_p7 = pnand %p2657_p5, %p2330_p6  ;;  %p2529_p8 = scmp.ne.s32.totalorder %s118_s24, %s2528_s25 }
   0xc   : > { %p2537_p13 = scmp.lt.s32.totalorder %s2528_s25, %s2528_s25 }
   0xd   : > { %p2530_p9 = pneg %p2331_p7 }
   0xe   : > { %p2538_p0 = por %p2537_p13, %p2536_p12 }
   0xf   : > { %p2531_p10 = pnand %p2530_p9, %p2529_p8 }
  0x11   : > { %p2532_p11 = pneg %p2531_p10 }
  0x13   : > { %p2539_p1 = pnand %p2538_p0, %p2532_p11 }
  0x15   : > { %2542 = shalt.err (!%p2539_p1)
}
  0x16   : > { %s2595_s26 = smov [#allocation4]   ;;  %130 = sbr.rel (%p2653_p3) target bundleno = 894 (0x37e), region = 28 }
  0x17   : > { %2333 = dma.vmem_to_smem (!%p2331_p7), %s118_s24, 16, %s2595_s26, [#allocation5]  }
  0x1d   : > { %2564 = dma.done.wait (%p2657_p5), [#allocation5], 16  }
  0x1e   : > { %2566 = vsyncadd (%p2657_p5), [#allocation5], 4294967280 }
  0x1f   : > { %136 = sfence }
  0x20   : > { %p151_p2 = scmp.lt.s32.totalorder %s2581_s13, 1  ;;  %p153_p4 = scmp.lt.s32.totalorder %s2577_s12, 1 }
  0x21   : > { %s2132_s27 = sshll.u32 %s2577_s12, 3  ;;  %s2133_s28 = sshll.u32 %s2581_s13, 7 }
  0x22   : > { %s4161_s13 = smov (!%p151_p2, %s2581_s13), 1  ;;  %s162_s4 = sadd.s32 %s2133_s28, %s2132_s27 }
  0x23   : > { %s154_s29 = scalar_select %p153_p4, %s2577_s12, 1 }
  0x24   : > { %s2130_s30 = sshll.u32 %s4161_s13, 1  ;;  %s163_s8 = scalar_lea.vmem %s3999_s0, %s162_s4 }
  0x25   : > { %s156_s5 = sadd.s32 %s2130_s30, %s154_s29  ;;  %v201_v0 = vld [vmem:[%s163_s8] sm:$0xff]  ;;  %v203_v1 = vld [vmem:[%s163_s8 + $0x8] sm:$0xff]  ;;  %v2134_v2 = vld [vmem:[%s163_s8 + $0x10] sm:$0x3] }
  0x26   : > { %s2131_s9 = sshll.u32 %s156_s5, 3  ;;  %202 = vst [vmem:[#allocation2] sm:$0xff] %v201_v0  ;;  %204 = vst [vmem:[#allocation2 + $0x8] sm:$0xff] %v203_v1 }
  0x27   : > { %s2690_s17 = scalar_lea.vmem %s4002_s3, %s2131_s9  ;;  %215 = vst [vmem:[#allocation2 + $0x10] sm:$0x3] %v2134_v2 }
  0x28   : > { %219 = vsyncadd [#allocation3], 288  ;;  %v2138_v3 = vld [vmem:[%s163_s8 + $0x20] sm:$0xff]  ;;  %v2139_v4 = vld [vmem:[%s163_s8 + $0x28] sm:$0xff] }
  0x29   : > { %263 = vst [vmem:[#allocation2 + $0x12] sm:$0xff] %v2138_v3  ;;  %265 = vst [vmem:[#allocation2 + $0x1a] sm:$0xff] %v2139_v4  ;;  %v2140_v5 = vld [vmem:[%s163_s8 + $0x30] sm:$0x3] }
  0x2a   : > { %276 = vst [vmem:[#allocation2 + $0x22] sm:$0x3] %v2140_v5 }
  0x2b   : > { %280 = vsyncadd [#allocation3 + $0x1], 288  ;;  %v2145_v6 = vld [vmem:[%s163_s8 + $0x40] sm:$0xff]  ;;  %v2146_v7 = vld [vmem:[%s163_s8 + $0x48] sm:$0xff] }
  0x2c   : > { %324 = vst [vmem:[#allocation2 + $0x24] sm:$0xff] %v2145_v6  ;;  %326 = vst [vmem:[#allocation2 + $0x2c] sm:$0xff] %v2146_v7  ;;  %v2147_v8 = vld [vmem:[%s163_s8 + $0x50] sm:$0x3] }
  0x2d   : > { %337 = vst [vmem:[#allocation2 + $0x34] sm:$0x3] %v2147_v8 }
  0x2e   : > { %341 = vsyncadd [#allocation3 + $0x2], 288  ;;  %v2152_v9 = vld [vmem:[%s163_s8 + $0x60] sm:$0xff]  ;;  %v2153_v10 = vld [vmem:[%s163_s8 + $0x68] sm:$0xff] }
  0x2f   : > { %385 = vst [vmem:[#allocation2 + $0x36] sm:$0xff] %v2152_v9  ;;  %387 = vst [vmem:[#allocation2 + $0x3e] sm:$0xff] %v2153_v10  ;;  %v2154_v11 = vld [vmem:[%s163_s8 + $0x70] sm:$0x3] }
  0x30   : > { %398 = vst [vmem:[#allocation2 + $0x46] sm:$0x3] %v2154_v11 }
  0x31   : > { %402 = vsyncadd [#allocation3 + $0x3], 288 }
  0x32   : > { %2567 = dma.done.wait [#allocation3], 288 }
  0x33   : > { %2568 = vsyncadd [#allocation3], 4294967008 }
  0x34   : > { %2569 = dma.done.wait [#allocation3 + $0x1], 288 }
  0x35   : > { %2570 = vsyncadd [#allocation3 + $0x1], 4294967008 }
  0x36   : > { %2571 = dma.done.wait [#allocation3 + $0x2], 288 }
  0x37   : > { %2572 = vsyncadd [#allocation3 + $0x2], 4294967008 }
  0x38   : > { %2573 = dma.done.wait [#allocation3 + $0x3], 288 }
  0x39   : > { %2574 = vsyncadd [#allocation3 + $0x3], 4294967008  ;;  %v2596_v12 = vmov 0   ;;  %v2694_v13 = vld [vmem:[#allocation2] sm:$0xff]  ;;  %v413_v14 = vld [vmem:[#allocation2 + $0x8] sm:$0xff]  ;;  %s2597_s13 = smov 1  }
  0x3a   : > { %504 = vmatprep.subr.bf16.mxu0 %v2596_v12  ;;  %812 = vmatprep.subr.bf16.mxu1 %v2596_v12  ;;  %v414_v15 = vld [vmem:[#allocation2 + $0x10] sm:$0xff]  ;;  %v2381_v17 = vpack.i.bf16 %v413_v14, %v2694_v13  ;;  %v415_v18 = vld [vmem:[#allocation2 + $0x18] sm:$0xff]  ;;  %v416_v19 = vld [vmem:[#allocation2 + $0x20] sm:$0xff]  ;;  %s2598_s20 = smov 127   ;;  %vm4003_vm0 = vcmask 719872   ;;  %vm500_vm1 = vcmask 1043456  }
  0x3b   : > { %v2696_v16 = vpack.c.bf16 %v414_v15, %v413_v14  ;;  %v417_v20 = vld [vmem:[#allocation2 + $0x28] sm:$0xff]  ;;  %v418_v21 = vld [vmem:[#allocation2 + $0x30] sm:$0xff]  ;;  %v2699_v23 = vpack.c.bf16 %v416_v19, %v415_v18  ;;  %v419_v24 = vld [vmem:[#allocation2 + $0x38] sm:$0xff]  ;;  %v2386_v26 = vpack.i.bf16 %v415_v18, %v414_v15  ;;  %s2168_s24 = sadd.s32 4294967292, %s2132_s27  ;;  %s917_s6 = sld [smem:[#allocation4]] }
  0x3c   : > { %v2391_v22 = vpack.i.bf16 %v417_v20, %v416_v19  ;;  %v420_v25 = vld [vmem:[#allocation2 + $0x40] sm:$0xff]  ;;  %2382 = vrot.lane.b32.xlu0 %v2381_v17, %s2597_s13  ;;  %v2702_v27 = vpack.c.bf16 %v418_v21, %v417_v20  ;;  %v2396_v29 = vpack.i.bf16 %v419_v24, %v418_v21  ;;  %v2423_v30 = vld [vmem:[%s4000_s1 + $0x1b4] ss:$8 sps:$4 sm:$0xff]   ;;  %v2421_v5 = vld [vmem:[%s4000_s1 + $0x1b0] ss:$8 sps:$4 sm:$0xff]   ;;  %s2165_s7 = sld [smem:[#allocation4 + $0x1c]] }
  0x3d   : > { %v2704_v28 = vpack.c.bf16 %v420_v25, %v419_v24  ;;  %v2426_v31 = vld [vmem:[%s4000_s1 + $0x4] ss:$8 sps:$4 sm:$0xff]   ;;  %2160 = vmatprep.mubr.msk.bf16.mxu0 %vm4003_vm0, %v2423_v30  ;;  %v2424_v6 = vld [vmem:[%s4000_s1] ss:$8 sps:$4 sm:$0xff]   ;;  %v2429_v8 = vld [vmem:[%s4000_s1 + $0x14] ss:$8 sps:$4 sm:$0xff]  }
  0x3e   : > { %2392 = vrot.lane.b32.xlu1 %v2391_v22, %s2597_s13  ;;  %2203 = vmatprep.mubr.msk.bf16.mxu1 %vm4003_vm0, %v2426_v31  ;;  %v2427_v7 = vld [vmem:[%s4000_s1 + $0x1c4] ss:$8 sps:$4 sm:$0xff]   ;;  %v2431_v9 = vld [vmem:[%s4000_s1 + $0x1c0] ss:$8 sps:$4 sm:$0xff]   ;;  %v2432_v10 = vld [vmem:[%s4000_s1 + $0x10] ss:$8 sps:$4 sm:$0xff]  }
  0x3f   : > { %v2433_v11 = vld [vmem:[%s4000_s1 + $0x24] ss:$8 sps:$4 sm:$0xff]   ;;  %v2435_v14 = vld [vmem:[%s4000_s1 + $0x20] ss:$8 sps:$4 sm:$0xff]   ;;  %v2436_v15 = vld [vmem:[%s4000_s1 + $0x34] ss:$8 sps:$4 sm:$0xff]  }
  0x40   : > { %2387 = vrot.lane.b32.xlu0 %v2386_v26, %s2597_s13  ;;  %v2439_v18 = vld [vmem:[%s4000_s1 + $0x44] ss:$8 sps:$4 sm:$0xff]   ;;  %v2441_v19 = vld [vmem:[%s4000_s1 + $0x40] ss:$8 sps:$4 sm:$0xff]   ;;  %v2442_v20 = vld [vmem:[%s4000_s1 + $0x54] ss:$8 sps:$4 sm:$0xff]  }
  0x41   : > { %v2444_v21 = vld [vmem:[%s4000_s1 + $0x50] ss:$8 sps:$4 sm:$0xff]   ;;  %v2447_v24 = vld [vmem:[%s4000_s1 + $0x60] ss:$8 sps:$4 sm:$0xff]   ;;  %v2454_v30 = vld [vmem:[%s4000_s1 + $0x84] ss:$8 sps:$4 sm:$0xff]  }
  0x42   : > { %2397 = vrot.lane.b32.xlu1 %v2396_v29, %s2597_s13  ;;  %v2457_v31 = vld [vmem:[%s4000_s1 + $0xa4] ss:$8 sps:$4 sm:$0xff]   ;;  %s3214_s8 = sld [smem:[#allocation4 + $0x1]]  ;;  %s3226_s9 = sld [smem:[#allocation4 + $0x2]] }
  0x43   : > { %s3270_s10 = sld [smem:[#allocation4 + $0x3]]  ;;  %s3307_s11 = sld [smem:[#allocation4 + $0x4]] }
  0x44   : > { %437 = vrot.lane.b32.xlu0 %v420_v25, %s2597_s13  ;;  %s2216_s21 = sld [smem:[#allocation4 + $0x5]]  ;;  %s2217_s22 = sld [smem:[#allocation4 + $0x6]] }
  0x45   : > { %s3375_s23 = sld [smem:[#allocation4 + $0x7]]  ;;  %s3398_s25 = sld [smem:[#allocation4 + $0x8]] }
  0x46   : > { %2402 = vrot.lane.b32.xlu1 %v2381_v17, %s2598_s20  ;;  %v2438_v17 = vld [vmem:[%s4000_s1 + $0x30] ss:$8 sps:$4 sm:$0xff]   ;;  %s3400_s26 = sld [smem:[#allocation4 + $0xa]]  ;;  %s3426_s12 = sld [smem:[#allocation4 + $0xb]] }
  0x47   : > { %s3458_s27 = sld [smem:[#allocation4 + $0x1b]]  ;;  %s3461_s28 = sld [smem:[#allocation4 + $0xc]] }
  0x48   : > { %2407 = vrot.lane.b32.xlu0 %v2386_v26, %s2598_s20  ;;  %v2450_v26 = vld [vmem:[%s4000_s1 + $0x70] ss:$8 sps:$4 sm:$0xff]   ;;  %s3472_s29 = sld [smem:[#allocation4 + $0xd]]  ;;  %s3487_s30 = sld [smem:[#allocation4 + $0xe]] }
  0x49   : > { %s3553_s4 = sld [smem:[#allocation4 + $0xf]]  ;;  %s3567_s5 = sld [smem:[#allocation4 + $0x10]] }
  0x4a   : > { %2412 = vrot.lane.b32.xlu1 %v2391_v22, %s2598_s20  ;;  %v2445_v22 = vld [vmem:[%s4000_s1 + $0x64] ss:$8 sps:$4 sm:$0xff]  }
  0x4c   : > { %2417 = vrot.lane.b32.xlu0 %v2396_v29, %s2598_s20  ;;  %v2451_v29 = vld [vmem:[%s4000_s1 + $0x90] ss:$8 sps:$4 sm:$0xff]  }
  0x4e   : > { %455 = vrot.lane.b32.xlu1 %v420_v25, %s2598_s20  ;;  %v2448_v25 = vld [vmem:[%s4000_s1 + $0x74] ss:$8 sps:$4 sm:$0xff]  }
  0xae   : > { %v2383_v32 = vpop.permute.xlu0 %2382 }
  0xaf   : > { %v2385_v33 = vunpack.i.h.bf16 %v2383_v32  ;;  %v2384_v34 = vunpack.i.l.bf16 %v2383_v32  ;;  %v2456_v32 = vld [vmem:[%s4000_s1 + $0x80] ss:$8 sps:$4 sm:$0xff]  }
  0xb0   : > { %v2393_v35 = vpop.permute.xlu1 %2392 }
  0xb1   : > { %v2723_v36 = vpack.c.bf16 %v2385_v33, %v2384_v34  ;;  %v2395_v40 = vunpack.i.h.bf16 %v2393_v35  ;;  %v2394_v41 = vunpack.i.l.bf16 %v2393_v35  ;;  %v2459_v33 = vld [vmem:[%s4000_s1 + $0xa0] ss:$8 sps:$4 sm:$0xff]   ;;  %v2460_v34 = vld [vmem:[%s4000_s1 + $0xb4] ss:$8 sps:$4 sm:$0xff]   ;;  %v2462_v35 = vld [vmem:[%s4000_s1 + $0xb0] ss:$8 sps:$4 sm:$0xff]  }
  0xb2   : > { %v2388_v37 = vpop.permute.xlu0 %2387 }
  0xb3   : > { %v2390_v38 = vunpack.i.h.bf16 %v2388_v37  ;;  %v2389_v39 = vunpack.i.l.bf16 %v2388_v37  ;;  %505 = vmatpush1.bf16.msra.mxu0 %v2723_v36  ;;  %813 = vmatpush1.bf16.msra.mxu1 %v2723_v36  ;;  %v2731_v44 = vpack.c.bf16 %v2395_v40, %v2394_v41  ;;  %v2465_v37 = vld [vmem:[%s4000_s1 + $0xc0] ss:$8 sps:$4 sm:$0xff]   ;;  %v2484_v41 = vld [vmem:[%s4000_s1 + $0x144] ss:$8 sps:$4 sm:$0xff]  }
  0xb4   : > { %506 = vmatprep.subr.bf16.mxu0 %v2596_v12  ;;  %814 = vmatprep.subr.bf16.mxu1 %v2596_v12  ;;  %v2398_v42 = vpop.permute.xlu1 %2397  ;;  %v2471_v40 = vld [vmem:[%s4000_s1 + $0xe0] ss:$8 sps:$4 sm:$0xff]  }
  0xb5   : > { %v2729_v43 = vpack.c.bf16 %v2390_v38, %v2389_v39  ;;  %v2400_v45 = vunpack.i.h.bf16 %v2398_v42  ;;  %v2399_v46 = vunpack.i.l.bf16 %v2398_v42  ;;  %v2466_v38 = vld [vmem:[%s4000_s1 + $0xd4] ss:$8 sps:$4 sm:$0xff]   ;;  %v2468_v39 = vld [vmem:[%s4000_s1 + $0xd0] ss:$8 sps:$4 sm:$0xff]   ;;  %v2486_v42 = vld [vmem:[%s4000_s1 + $0x140] ss:$8 sps:$4 sm:$0xff]  }
  0xb6   : > { %v438_v48 = vpop.permute.xlu0 %437 }
  0xb7   : > { %507 = vmatpush1.bf16.msra.mxu0 %v2729_v43  ;;  %815 = vmatpush1.bf16.msra.mxu1 %v2729_v43  ;;  %v2737_v47 = vpack.c.bf16 %v2400_v45, %v2399_v46  ;;  %v2746_v49 = vpack.c.bf16 %v2694_v13, %v438_v48  ;;  %v2453_v13 = vld [vmem:[%s4000_s1 + $0x94] ss:$8 sps:$4 sm:$0xff]   ;;  %v583_v45 = vlaneseq  ;;  %v2477_v48 = vld [vmem:[%s4000_s1 + $0x100] ss:$8 sps:$4 sm:$0xff]  }
  0xb8   : > { %508 = vmatprep.subr.bf16.mxu0 %v2596_v12  ;;  %816 = vmatprep.subr.bf16.mxu1 %v2596_v12  ;;  %v2403_v50 = vpop.permute.xlu1 %2402  ;;  %v2487_v46 = vld [vmem:[%s4000_s1 + $0x154] ss:$8 sps:$4 sm:$0xff]  }
  0xb9   : > { %v2405_v51 = vunpack.i.h.bf16 %v2403_v50  ;;  %v2404_v52 = vunpack.i.l.bf16 %v2403_v50  ;;  %v3031_v50 = vand.u32 127, %v583_v45 }
  0xba   : > { %v2408_v53 = vpop.permute.xlu0 %2407 }
  0xbb   : > { %509 = vmatpush1.bf16.msra.mxu0 %v2731_v44  ;;  %817 = vmatpush1.bf16.msra.mxu1 %v2731_v44  ;;  %v2766_v54 = vpack.c.bf16 %v2405_v51, %v2404_v52  ;;  %v2410_v55 = vunpack.i.h.bf16 %v2408_v53  ;;  %v2409_v56 = vunpack.i.l.bf16 %v2408_v53  ;;  %v587_v51 = vstv %s2168_s24  ;;  %s3378_s24 = sld [smem:[#allocation4 + $0x9]] }
  0xbc   : > { %510 = vmatprep.subr.bf16.mxu0 %v2596_v12  ;;  %818 = vmatprep.subr.bf16.mxu1 %v2596_v12  ;;  %v2413_v57 = vpop.permute.xlu1 %2412  ;;  %v3039_v53 = vadd.s32 4294967295, %v3031_v50  ;;  %vm4004_vm7 = vcmp.lt.s32.totalorder %v3031_v50, 16 }
  0xbd   : > { %v2772_v58 = vpack.c.bf16 %v2410_v55, %v2409_v56  ;;  %v2415_v59 = vunpack.i.h.bf16 %v2413_v57  ;;  %v2414_v60 = vunpack.i.l.bf16 %v2413_v57  ;;  %v2490_v57 = vld [vmem:[%s4000_s1 + $0x164] ss:$8 sps:$4 sm:$0xff]  }
  0xbe   : > { %v2418_v61 = vpop.permute.xlu0 %2417  ;;  %vm601_vm2 = vcmp.ge.s32.totalorder %v3039_v53, 0  ;;  %vm4005_vm5 = vcmp.lt.s32.totalorder %v3039_v53, 16 }
  0xbf   : > { %511 = vmatpush1.bf16.msra.mxu0 %v2737_v47  ;;  %819 = vmatpush1.bf16.msra.mxu1 %v2737_v47  ;;  %v2778_v62 = vpack.c.bf16 %v2415_v59, %v2414_v60  ;;  %v2420_v63 = vunpack.i.h.bf16 %v2418_v61  ;;  %v2419_v0 = vunpack.i.l.bf16 %v2418_v61  ;;  %v2492_v59 = vld [vmem:[%s4000_s1 + $0x160] ss:$8 sps:$4 sm:$0xff]   ;;  %v2480_v60 = vld [vmem:[%s4000_s1 + $0x110] ss:$8 sps:$4 sm:$0xff]  }
  0xc0   : > { %512 = vmatprep.subr.bf16.mxu0 %v2596_v12  ;;  %820 = vmatprep.subr.bf16.mxu1 %v2596_v12  ;;  %v456_v1 = vpop.permute.xlu1 %455 }
  0xc1   : > { %v2784_v2 = vpack.c.bf16 %v2420_v63, %v2419_v0  ;;  %v470_v3 = vpack.c.bf16 %v456_v1, %v456_v1  ;;  %v2493_v0 = vld [vmem:[%s4000_s1 + $0x174] ss:$8 sps:$4 sm:$0xff]   ;;  %v4042_v1 = vmov 0 }
  0xc3   : > { %513 = vmatpush1.bf16.msra.mxu0 %v2746_v49  ;;  %821 = vmatpush1.bf16.msra.mxu1 %v2746_v49  ;;  %v2792_v4 = vsel %vm500_vm1, %v470_v3, 0  ;;  %v2495_v3 = vld [vmem:[%s4000_s1 + $0x170] ss:$8 sps:$4 sm:$0xff]  }
  0xc4   : > { %514 = vmatprep.subr.bf16.mxu0 %v2596_v12  ;;  %822 = vmatprep.subr.bf16.mxu1 %v2596_v12 }
  0xc7   : > { %515 = vmatpush1.bf16.msra.mxu0 %v2696_v16  ;;  %823 = vmatpush1.bf16.msra.mxu1 %v2696_v16 }
  0xc8   : > { %516 = vmatprep.subr.bf16.mxu0 %v2596_v12  ;;  %824 = vmatprep.subr.bf16.mxu1 %v2596_v12 }
  0xcb   : > { %517 = vmatpush1.bf16.msra.mxu0 %v2699_v23  ;;  %825 = vmatpush1.bf16.msra.mxu1 %v2699_v23 }
  0xcc   : > { %518 = vmatprep.subr.bf16.mxu0 %v2596_v12  ;;  %826 = vmatprep.subr.bf16.mxu1 %v2596_v12 }
  0xcf   : > { %519 = vmatpush1.bf16.msra.mxu0 %v2702_v27  ;;  %827 = vmatpush1.bf16.msra.mxu1 %v2702_v27 }
  0xd0   : > { %520 = vmatprep.subr.bf16.mxu0 %v2596_v12  ;;  %828 = vmatprep.subr.bf16.mxu1 %v2596_v12 }
  0xd3   : > { %521 = vmatpush1.bf16.msra.mxu0 %v2704_v28  ;;  %829 = vmatpush1.bf16.msra.mxu1 %v2704_v28 }
  0xd4   : > { %522 = vmatprep.subr.bf16.mxu0 %v2596_v12  ;;  %830 = vmatprep.subr.bf16.mxu1 %v2596_v12 }
  0xd7   : > { %523 = vmatpush1.bf16.msra.mxu0 %v2766_v54  ;;  %831 = vmatpush1.bf16.msra.mxu1 %v2766_v54 }
  0xd8   : > { %524 = vmatprep.subr.bf16.mxu0 %v2596_v12  ;;  %832 = vmatprep.subr.bf16.mxu1 %v2596_v12 }
  0xdb   : > { %525 = vmatpush1.bf16.msra.mxu0 %v2772_v58  ;;  %833 = vmatpush1.bf16.msra.mxu1 %v2772_v58 }
  0xdc   : > { %526 = vmatprep.subr.bf16.mxu0 %v2596_v12  ;;  %834 = vmatprep.subr.bf16.mxu1 %v2596_v12 }
  0xdf   : > { %527 = vmatpush1.bf16.msra.mxu0 %v2778_v62  ;;  %835 = vmatpush1.bf16.msra.mxu1 %v2778_v62 }
  0xe0   : > { %528 = vmatprep.subr.bf16.mxu0 %v2596_v12  ;;  %836 = vmatprep.subr.bf16.mxu1 %v2596_v12 }
  0xe3   : > { %529 = vmatpush1.bf16.msra.mxu0 %v2784_v2  ;;  %837 = vmatpush1.bf16.msra.mxu1 %v2784_v2 }
  0xe4   : > { %530 = vmatprep.subr.bf16.mxu0 %v2596_v12  ;;  %838 = vmatprep.subr.bf16.mxu1 %v2596_v12 }
  0xe7   : > { %531 = vmatpush1.bf16.msra.mxu0 %v2792_v4  ;;  %839 = vmatpush1.bf16.msra.mxu1 %v2792_v4 }
  0xe8   : > { %1229 = vmatprep.subr.bf16.mxu0 %v2596_v12  ;;  %2298 = vmatprep.subr.bf16.mxu1 %v2596_v12 }
  0xea   : > { %537 = vmatmul.mubr.bf16.vlgmr.msra.gmra.mrb[0].mxu0 %v2421_v5  ;;  %845 = vmatmul.mubr.bf16.vlgmr.msra.gmra.mrb[0].mxu1 %v2424_v6  ;;  %v4050_v6 = vmov 0 }
  0xeb   : > { %1230 = vmatpush1.bf16.msra.mxu0 %v2723_v36  ;;  %2312 = vmatpush1.bf16.msra.mxu1 %v2723_v36 }
  0xec   : > { %1231 = vmatprep.subr.bf16.mxu0 %v2596_v12  ;;  %2299 = vmatprep.subr.bf16.mxu1 %v2596_v12 }
  0xed   : > { %2161 = vmatprep.mubr.msk.bf16.mxu0 %vm4003_vm0, %v2427_v7  ;;  %2204 = vmatprep.mubr.msk.bf16.mxu1 %vm4003_vm0, %v2429_v8 }
  0xef   : > { %1232 = vmatpush1.bf16.msra.mxu0 %v2729_v43  ;;  %2313 = vmatpush1.bf16.msra.mxu1 %v2729_v43 }
  0xf0   : > { %1233 = vmatprep.subr.bf16.mxu0 %v2596_v12  ;;  %2300 = vmatprep.subr.bf16.mxu1 %v2596_v12 }
  0xf2   : > { %545 = vmatmul.mubr.bf16.gmra.mrb[4].mxu0 %v2431_v9  ;;  %853 = vmatmul.mubr.bf16.gmra.mrb[4].mxu1 %v2432_v10  ;;  %v2496_v9 = vld [vmem:[%s4000_s1 + $0x184] ss:$8 sps:$4 sm:$0xff]   ;;  %v4059_v10 = vmov 0 }
  0xf3   : > { %1234 = vmatpush1.bf16.msra.mxu0 %v2731_v44  ;;  %2314 = vmatpush1.bf16.msra.mxu1 %v2731_v44 }
  0xf4   : > { %1235 = vmatprep.subr.bf16.mxu0 %v2596_v12  ;;  %2301 = vmatprep.subr.bf16.mxu1 %v2596_v12 }
  0xf5   : > { %2205 = vmatprep.mubr.msk.bf16.mxu1 %vm4003_vm0, %v2433_v11  ;;  %2238 = vmatprep.mubr.msk.bf16.mxu0 %vm4003_vm0, %v2453_v13  ;;  %v2498_v11 = vld [vmem:[%s4000_s1 + $0x180] ss:$8 sps:$4 sm:$0xff]   ;;  %v4063_v13 = vmov 0 }
  0xf7   : > { %1236 = vmatpush1.bf16.msra.mxu0 %v2737_v47  ;;  %2315 = vmatpush1.bf16.msra.mxu1 %v2737_v47 }
  0xf8   : > { %1237 = vmatprep.subr.bf16.mxu0 %v2596_v12  ;;  %2302 = vmatprep.subr.bf16.mxu1 %v2596_v12 }
  0xfa   : > { %861 = vmatmul.mubr.bf16.gmra.mrb[8].mxu1 %v2435_v14  ;;  %v2499_v14 = vld [vmem:[%s4000_s1 + $0x120] ss:$8 sps:$4 sm:$0xff]  }
  0xfb   : > { %1238 = vmatpush1.bf16.msra.mxu0 %v2746_v49  ;;  %2316 = vmatpush1.bf16.msra.mxu1 %v2746_v49 }
  0xfc   : > { %1239 = vmatprep.subr.bf16.mxu0 %v2596_v12  ;;  %2303 = vmatprep.subr.bf16.mxu1 %v2596_v12 }
  0xfd   : > { %2206 = vmatprep.mubr.msk.bf16.mxu1 %vm4003_vm0, %v2436_v15  ;;  %v2501_v15 = vld [vmem:[%s4000_s1 + $0x124] ss:$8 sps:$4 sm:$0xff]  }
  0xff   : > { %1240 = vmatpush1.bf16.msra.mxu0 %v2696_v16  ;;  %2317 = vmatpush1.bf16.msra.mxu1 %v2696_v16 }
 0x100   : > { %1241 = vmatprep.subr.bf16.mxu0 %v2596_v12  ;;  %2304 = vmatprep.subr.bf16.mxu1 %v2596_v12 }
 0x102   : > { %869 = vmatmul.mubr.bf16.gmra.mrb[12].mxu1 %v2438_v17 }
 0x103   : > { %1242 = vmatpush1.bf16.msra.mxu0 %v2699_v23  ;;  %2318 = vmatpush1.bf16.msra.mxu1 %v2699_v23 }
 0x104   : > { %1243 = vmatprep.subr.bf16.mxu0 %v2596_v12  ;;  %2305 = vmatprep.subr.bf16.mxu1 %v2596_v12 }
 0x105   : > { %2207 = vmatprep.mubr.msk.bf16.mxu1 %vm4003_vm0, %v2439_v18 }
 0x107   : > { %1244 = vmatpush1.bf16.msra.mxu0 %v2702_v27  ;;  %2319 = vmatpush1.bf16.msra.mxu1 %v2702_v27 }
 0x108   : > { %1245 = vmatprep.subr.bf16.mxu0 %v2596_v12  ;;  %2306 = vmatprep.subr.bf16.mxu1 %v2596_v12 }
 0x10a   : > { %877 = vmatmul.mubr.bf16.gmra.mrb[16].mxu1 %v2441_v19 }
 0x10b   : > { %1246 = vmatpush1.bf16.msra.mxu0 %v2704_v28  ;;  %2320 = vmatpush1.bf16.msra.mxu1 %v2704_v28 }
 0x10c   : > { %1247 = vmatprep.subr.bf16.mxu0 %v2596_v12  ;;  %2307 = vmatprep.subr.bf16.mxu1 %v2596_v12 }
 0x10d   : > { %2208 = vmatprep.mubr.msk.bf16.mxu1 %vm4003_vm0, %v2442_v20 }
 0x10f   : > { %1248 = vmatpush1.bf16.msra.mxu0 %v2766_v54  ;;  %2321 = vmatpush1.bf16.msra.mxu1 %v2766_v54 }
 0x110   : > { %1249 = vmatprep.subr.bf16.mxu0 %v2596_v12  ;;  %2308 = vmatprep.subr.bf16.mxu1 %v2596_v12 }
 0x112   : > { %885 = vmatmul.mubr.bf16.gmra.mrb[20].mxu1 %v2444_v21  ;;  %v2502_v21 = vld [vmem:[%s4000_s1 + $0x194] ss:$8 sps:$4 sm:$0xff]  }
 0x113   : > { %1250 = vmatpush1.bf16.msra.mxu0 %v2772_v58  ;;  %2322 = vmatpush1.bf16.msra.mxu1 %v2772_v58 }
 0x114   : > { %1251 = vmatprep.subr.bf16.mxu0 %v2596_v12  ;;  %2309 = vmatprep.subr.bf16.mxu1 %v2596_v12 }
 0x115   : > { %2209 = vmatprep.mubr.msk.bf16.mxu1 %vm4003_vm0, %v2445_v22  ;;  %v2504_v22 = vld [vmem:[%s4000_s1 + $0x190] ss:$8 sps:$4 sm:$0xff]  }
 0x117   : > { %1252 = vmatpush1.bf16.msra.mxu0 %v2778_v62  ;;  %2323 = vmatpush1.bf16.msra.mxu1 %v2778_v62 }
 0x118   : > { %1253 = vmatprep.subr.bf16.mxu0 %v2596_v12  ;;  %2310 = vmatprep.subr.bf16.mxu1 %v2596_v12 }
 0x11a   : > { %893 = vmatmul.mubr.bf16.gmra.mrb[24].mxu1 %v2447_v24 }
 0x11b   : > { %1254 = vmatpush1.bf16.msra.mxu0 %v2784_v2  ;;  %2324 = vmatpush1.bf16.msra.mxu1 %v2784_v2 }
 0x11c   : > { %1255 = vmatprep.subr.bf16.mxu0 %v2596_v12  ;;  %2311 = vmatprep.subr.bf16.mxu1 %v2596_v12 }
 0x11d   : > { %2210 = vmatprep.mubr.msk.bf16.mxu1 %vm4003_vm0, %v2448_v25 }
 0x11f   : > { %1256 = vmatpush1.bf16.msra.mxu0 %v2792_v4  ;;  %2325 = vmatpush1.bf16.msra.mxu1 %v2792_v4 }
 0x120   : > { %1644 = vmatprep.subr.bf16.mxu0 %v2596_v12 }
 0x122   : > { %901 = vmatmul.mubr.bf16.gmra.mrb[28].mxu1 %v2450_v26  ;;  %1262 = vmatmul.mubr.bf16.vlgmr.msra.gmra.mrb[8].mxu0 %v2451_v29  ;;  %v2505_v29 = vld [vmem:[%s4000_s1 + $0x1a4] ss:$8 sps:$4 sm:$0xff]  }
 0x123   : > { %1645 = vmatpush1.bf16.msra.mxu0 %v2723_v36  ;;  %2211 = vmatprep.mubr.msk.bf16.mxu1 %vm4003_vm0, %v2454_v30  ;;  %v2463_v36 = vld [vmem:[%s4000_s1 + $0xc4] ss:$8 sps:$4 sm:$0xff]   ;;  %v2507_v30 = vld [vmem:[%s4000_s1 + $0x1a0] ss:$8 sps:$4 sm:$0xff]  }
 0x124   : > { %1646 = vmatprep.subr.bf16.mxu0 %v2596_v12  ;;  %2239 = vmatprep.mubr.msk.bf16.mxu0 %vm4003_vm0, %v2457_v31 }
 0x127   : > { %1647 = vmatpush1.bf16.msra.mxu0 %v2729_v43  ;;  %v2474_v43 = vld [vmem:[%s4000_s1 + $0xf0] ss:$8 sps:$4 sm:$0xff]  }
 0x128   : > { %1648 = vmatprep.subr.bf16.mxu0 %v2596_v12 }
 0x12a   : > { %909 = vmatmul.mubr.bf16.gmra.mrb[32].mxu1 %v2456_v32  ;;  %1270 = vmatmul.mubr.bf16.gmra.mrb[12].mxu0 %v2459_v33 }
 0x12b   : > { %1649 = vmatpush1.bf16.msra.mxu0 %v2731_v44  ;;  %2240 = vmatprep.mubr.msk.bf16.mxu0 %vm4003_vm0, %v2460_v34  ;;  %v2475_v44 = vld [vmem:[%s4000_s1 + $0x104] ss:$8 sps:$4 sm:$0xff]  }
 0x12c   : > { %1650 = vmatprep.subr.bf16.mxu0 %v2596_v12 }
 0x12f   : > { %1651 = vmatpush1.bf16.msra.mxu0 %v2737_v47  ;;  %v2489_v47 = vld [vmem:[%s4000_s1 + $0x150] ss:$8 sps:$4 sm:$0xff]  }
 0x130   : > { %1652 = vmatprep.subr.bf16.mxu0 %v2596_v12 }
 0x132   : > { %1278 = vmatmul.mubr.bf16.gmra.mrb[16].mxu0 %v2462_v35 }
 0x133   : > { %1653 = vmatpush1.bf16.msra.mxu0 %v2746_v49  ;;  %2241 = vmatprep.mubr.msk.bf16.mxu0 %vm4003_vm0, %v2463_v36  ;;  %v3026_v49 = vshrl.u32 %v583_v45, 7  ;;  %v918_v36 = vstv %s917_s6  ;;  %s3582_s6 = sld [smem:[#allocation4 + $0x11]] }
 0x134   : > { %1654 = vmatprep.subr.bf16.mxu0 %v2596_v12 }
 0x135   : > { %4037 = vst [vmem:[#allocation15_spill] sm:$0xff] %v3026_v49  ;;  %v588_v52 = vadd.s32 %v587_v51, %v3026_v49  ;;  %v585_v55 = vadd.s32 8, %v3026_v49 }
 0x137   : > { %1655 = vmatpush1.bf16.msra.mxu0 %v2696_v16  ;;  %v2469_v16 = vld [vmem:[%s4000_s1 + $0xe4] ss:$8 sps:$4 sm:$0xff]   ;;  %v589_v56 = vadd.s32 %v587_v51, %v585_v55  ;;  %v654_v17 = vadd.s32 1, %v588_v52 }
 0x138   : > { %1656 = vmatprep.subr.bf16.mxu0 %v2596_v12 }
 0x139   : > { %v593_v61 = vadd.s32 4294967295, %v589_v56  ;;  %v655_v18 = vadd.s32 1, %v589_v56 }
 0x13a   : > { %1286 = vmatmul.mubr.bf16.gmra.mrb[20].mxu0 %v2465_v37 }
 0x13b   : > { %1657 = vmatpush1.bf16.msra.mxu0 %v2699_v23  ;;  %2242 = vmatprep.mubr.msk.bf16.mxu0 %vm4003_vm0, %v2466_v38  ;;  %v2483_v23 = vld [vmem:[%s4000_s1 + $0x134] ss:$8 sps:$4 sm:$0xff]   ;;  %vm595_vm10 = vcmp.ge.s32.totalorder %v593_v61, 0  ;;  %vm597_vm11 = vcmp.lt.s32.totalorder %v593_v61, 16 }
 0x13c   : > { %1658 = vmatprep.subr.bf16.mxu0 %v2596_v12  ;;  %2275 = vmatprep.mubr.msk.bf16.mxu1 %vm4003_vm0, %v2483_v23  ;;  %vm599_vm13 = vmand %vm595_vm10, %vm597_vm11 }
 0x13d   : > { %vm603_vm14 = vmand %vm599_vm13, %vm601_vm2 }
 0x13e   : > { %vm3087_vm1 = vmand %vm603_vm14, %vm4005_vm5 }
 0x13f   : > { %1659 = vmatpush1.bf16.msra.mxu0 %v2702_v27  ;;  %v2481_v27 = vld [vmem:[%s4000_s1 + $0x130] ss:$8 sps:$4 sm:$0xff]  }
 0x140   : > { %1660 = vmatprep.subr.bf16.mxu0 %v2596_v12  ;;  %1685 = vmatmul.mubr.bf16.vlgmr.msra.gmra.mrb[36].mxu1 %v2481_v27 }
 0x141   : > { %2276 = vmatprep.mubr.msk.bf16.mxu1 %vm4003_vm0, %v2484_v41  ;;  %v570_v41 = vstv %s2165_s7  ;;  %s3589_s7 = sld [smem:[#allocation4 + $0x13]] }
 0x142   : > { %1294 = vmatmul.mubr.bf16.gmra.mrb[24].mxu0 %v2468_v39 }
 0x143   : > { %1661 = vmatpush1.bf16.msra.mxu0 %v2704_v28  ;;  %2243 = vmatprep.mubr.msk.bf16.mxu0 %vm4003_vm0, %v2469_v16  ;;  %v2472_v28 = vld [vmem:[%s4000_s1 + $0xf4] ss:$8 sps:$4 sm:$0xff]  }
 0x144   : > { %1662 = vmatprep.subr.bf16.mxu0 %v2596_v12 }
 0x147   : > { %1663 = vmatpush1.bf16.msra.mxu0 %v2766_v54  ;;  %v592_v54 = vadd.s32 4294967295, %v588_v52 }
 0x148   : > { %1664 = vmatprep.subr.bf16.mxu0 %v2596_v12  ;;  %1693 = vmatmul.mubr.bf16.gmra.mrb[40].mxu1 %v2486_v42 }
 0x149   : > { %2277 = vmatprep.mubr.msk.bf16.mxu1 %vm4003_vm0, %v2487_v46  ;;  %vm594_vm3 = vcmp.ge.s32.totalorder %v592_v54, 0  ;;  %vm596_vm4 = vcmp.lt.s32.totalorder %v592_v54, 16 }
 0x14a   : > { %1302 = vmatmul.mubr.bf16.gmra.mrb[28].mxu0 %v2471_v40  ;;  %vm3048_vm6 = vmand %vm594_vm3, %vm596_vm4  ;;  %vm632_vm4 = vcmp.ge.s32.totalorder %v588_v52, 0  ;;  %v4007_v40 = vmov 0.0  }
 0x14b   : > { %1665 = vmatpush1.bf16.msra.mxu0 %v2772_v58  ;;  %2244 = vmatprep.mubr.msk.bf16.mxu0 %vm4003_vm0, %v2472_v28  ;;  %vm602_vm8 = vmand %vm3048_vm6, %vm601_vm2 }
 0x14c   : > { %1666 = vmatprep.subr.bf16.mxu0 %v2596_v12  ;;  %vm3067_vm9 = vmand %vm602_vm8, %vm4005_vm5  ;;  %vm634_vm8 = vcmp.lt.s32.totalorder %v588_v52, 16 }
 0x14d   : > { %vm3078_vm12 = vmand %vm3048_vm6, %vm4004_vm7  ;;  %v3223_v28 = vsel %vm3067_vm9, 1.0, %v4007_v40 }
 0x14e   : > { %v4043_v1 = vsel %vm3078_vm12, 4294967295, %v4042_v1  ;;  %vm3096_vm3 = vmand %vm599_vm13, %vm4004_vm7  ;;  %vm635_vm7 = vcmp.lt.s32.totalorder %v589_v56, 16 }
 0x14f   : > { %1667 = vmatpush1.bf16.msra.mxu0 %v2778_v62  ;;  %v621_v62 = vadd.s32 1, %v3031_v50  ;;  %vm636_vm14 = vmand %vm632_vm4, %vm634_vm8 }
 0x150   : > { %1668 = vmatprep.subr.bf16.mxu0 %v2596_v12  ;;  %1701 = vmatmul.mubr.bf16.gmra.mrb[44].mxu1 %v2489_v47  ;;  %vm638_vm5 = vmand %vm636_vm14, %vm601_vm2 }
 0x151   : > { %2278 = vmatprep.mubr.msk.bf16.mxu1 %vm4003_vm0, %v2490_v57  ;;  %vm4006_vm15 = vcmp.lt.s32.totalorder %v621_v62, 16  ;;  %vm4058_vm4 = vcmp.lt.s32.totalorder %v621_v62, 16 }
 0x152   : > { %1310 = vmatmul.mubr.bf16.gmra.mrb[32].mxu0 %v2474_v43  ;;  %vm3103_vm10 = vmand %vm3048_vm6, %vm4006_vm15  ;;  %v928_v43 = vstv %s3214_s8  ;;  %s3591_s8 = sld [smem:[#allocation4 + $0x14]] }
 0x153   : > { %1669 = vmatpush1.bf16.msra.mxu0 %v2784_v2  ;;  %2245 = vmatprep.mubr.msk.bf16.mxu0 %vm4003_vm0, %v2475_v44  ;;  %vm3108_vm11 = vmand %vm599_vm13, %vm4006_vm15  ;;  %v3231_v44 = vsel %vm3087_vm1, 1.0, %v4007_v40  ;;  %vm1011_vm1 = vcmp.lt.s32.totalorder %v3026_v49, 1 }
 0x154   : > { %1670 = vmatprep.subr.bf16.mxu0 %v2596_v12  ;;  %v2478_v12 = vld [vmem:[%s4000_s1 + $0x114] ss:$8 sps:$4 sm:$0xff]   ;;  %v4051_v6 = vsel %vm3108_vm11, 4294967295, %v4050_v6  ;;  %vm3132_vm8 = vmand %vm636_vm14, %vm4058_vm4  ;;  %vm658_vm14 = vcmp.lt.s32.totalorder %v654_v17, 16 }
 0x155   : > { %v4060_v10 = vsel %vm3132_vm8, 4294967295, %v4059_v10 }
 0x157   : > { %1671 = vmatpush1.bf16.msra.mxu0 %v2792_v4  ;;  %v4046_v4 = vmov 0 }
 0x158   : > { %1709 = vmatmul.mubr.bf16.gmra.mrb[48].mxu1 %v2492_v59  ;;  %v4047_v4 = vsel %vm3096_vm3, 4294967295, %v4046_v4  ;;  %vm4052_vm3 = vcmp.lt.s32.totalorder %v3039_v53, 16 }
 0x159   : > { %2279 = vmatprep.mubr.msk.bf16.mxu1 %vm4003_vm0, %v2493_v0  ;;  %vm3116_vm12 = vmand %vm638_vm5, %vm4052_vm3  ;;  %vm4088_vm9 = vnez %v4047_v4  ;;  %v938_v4 = vstv %s3226_s9  ;;  %s3596_s9 = sld [smem:[#allocation4 + $0x15]] }
 0x15a   : > { %1318 = vmatmul.mubr.bf16.gmra.mrb[36].mxu0 %v2477_v48  ;;  %vm4055_vm15 = vmmov %vm4052_vm3  ;;  %vm656_vm3 = vcmp.ge.s32.totalorder %v654_v17, 0  ;;  %v3256_v59 = vsel %vm4088_vm9, 1.0, %v4007_v40  ;;  %v3286_v17 = vsel %vm3103_vm10, 1.0, %v4007_v40  ;;  %vm1016_vm10 = vcmp.lt.s32.totalorder %v3026_v49, 7 }
 0x15b   : > { %2246 = vmatprep.mubr.msk.bf16.mxu0 %vm4003_vm0, %v2478_v12  ;;  %vm633_vm0 = vcmp.ge.s32.totalorder %v589_v56, 0  ;;  %vm4062_vm5 = vmmov %vm4058_vm4  ;;  %vm659_vm4 = vcmp.lt.s32.totalorder %v655_v18, 16 }
 0x15c   : > { %vm637_vm6 = vmand %vm633_vm0, %vm635_vm7  ;;  %vm4061_vm0 = vcmask 719872  }
 0x15d   : > { %vm639_vm13 = vmand %vm637_vm6, %vm601_vm2 }
 0x15e   : > { %vm3124_vm11 = vmand %vm639_vm13, %vm4055_vm15 }
 0x15f   : > { %vm3141_vm7 = vmand %vm637_vm6, %vm4062_vm5  ;;  %vm657_vm6 = vcmp.ge.s32.totalorder %v655_v18, 0  ;;  %vm4068_vm5 = vcmp.lt.s32.totalorder %v3039_v53, 16 }
 0x160   : > { %1717 = vmatmul.mubr.bf16.gmra.mrb[52].mxu1 %v2495_v3  ;;  %v4064_v13 = vsel %vm3141_vm7, 4294967295, %v4063_v13  ;;  %vm4065_vm15 = vmmov %vm4061_vm0 }
 0x161   : > { %2280 = vmatprep.mubr.msk.bf16.mxu1 %vm4061_vm0, %v2496_v9  ;;  %vm3152_vm13 = vmand %vm656_vm3, %vm658_vm14 }
 0x162   : > { %1326 = vmatmul.mubr.bf16.gmra.mrb[40].mxu0 %v2480_v60  ;;  %vm662_vm0 = vmand %vm3152_vm13, %vm601_vm2 }
 0x163   : > { %2274 = vmatprep.mubr.msk.bf16.mxu0 %vm4065_vm15, %v2501_v15  ;;  %vm3162_vm7 = vmand %vm662_vm0, %vm4068_vm5  ;;  %vm4074_vm0 = vcmask 719872  }
 0x164   : > { %vm661_vm15 = vmand %vm657_vm6, %vm659_vm4  ;;  %vm4075_vm6 = vcmp.lt.s32.totalorder %v3031_v50, 16 }
 0x165   : > { %vm663_vm3 = vmand %vm661_vm15, %vm601_vm2 }
 0x166   : > { %vm4071_vm14 = vmmov %vm4068_vm5 }
 0x167   : > { %vm3176_vm8 = vmand %vm663_vm3, %vm4071_vm14  ;;  %vm4081_vm3 = vcmp.lt.s32.totalorder %v621_v62, 16 }
 0x168   : > { %1725 = vmatmul.mubr.bf16.gmra.mrb[56].mxu1 %v2498_v11  ;;  %vm3185_vm4 = vmand %vm3152_vm13, %vm4075_vm6 }
 0x169   : > { %2281 = vmatprep.mubr.msk.bf16.mxu1 %vm4074_vm0, %v2502_v21  ;;  %vm4078_vm2 = vmmov %vm4075_vm6 }
 0x16a   : > { %1677 = vmatmul.mubr.bf16.vlgmr.msra.gmra.mrb[44].mxu0 %v2499_v14  ;;  %vm3191_vm5 = vmand %vm661_vm15, %vm4078_vm2 }
 0x16b   : > { %vm3204_vm14 = vmand %vm3152_vm13, %vm4081_vm3  ;;  %vm4087_vm13 = vnez %v4043_v1 }
 0x16c   : > { %vm4084_vm6 = vmmov %vm4081_vm3  ;;  %v3239_v47 = vsel %vm4087_vm13, 1.0, %v4007_v40 }
 0x16d   : > { %vm3210_vm2 = vmand %vm661_vm15, %vm4084_vm6  ;;  %vm4089_vm15 = vnez %v4051_v6  ;;  %v948_v6 = vstv %s3270_s10  ;;  %s3598_s10 = sld [smem:[#allocation4 + $0x16]] }
 0x170   : > { %1733 = vmatmul.mubr.bf16.gmra.mrb[60].mxu1 %v2504_v22 }
 0x171   : > { %2282 = vmatprep.mubr.msk.bf16.mxu1 %vm4074_vm0, %v2505_v29  ;;  %v3293_v29 = vsel %vm4089_vm15, 1.0, %v4007_v40 }
 0x178   : > { %1741 = vmatmul.mubr.bf16.gmra.mrb[64].mxu1 %v2507_v30 }
 0x1bd   : > { %v3216_v33 = vpop.f32.mrb[0].mxu0  ;;  %v846_v34 = vpop.f32.mrb[0].mxu1 }
 0x1be   : > { %v540_v35 = vpop.f32.mrb[1].mxu0  ;;  %v848_v37 = vpop.f32.mrb[1].mxu1  ;;  %v919_v27 = vadd.f32 %v918_v36, %v846_v34 }
 0x1bf   : > { %v3218_v38 = vpop.f32.mrb[2].mxu0  ;;  %v849_v39 = vpop.f32.mrb[2].mxu1 }
 0x1c0   : > { %v543_v16 = vpop.f32.mrb[3].mxu0  ;;  %v851_v23 = vpop.f32.mrb[3].mxu1  ;;  %v920_v42 = vadd.f32 %v918_v36, %v849_v39  ;;  %v3234_v46 = vmul.f32 %v3223_v28, %v919_v27  ;;  %v3317_v27 = vsel %vm3116_vm12, 1.0, %v4007_v40  ;;  %vm4090_vm12 = vnez %v4060_v10 }
 0x1c2   : > { %v3244_v54 = vmul.f32 %v3231_v44, %v920_v42  ;;  %v923_v61 = vand.u32 2147483647, %v3234_v46 }
 0x1c4   : > { %v924_v2 = vand.u32 2147483647, %v3244_v54 }
 0x1c5   : > { %v546_v45 = vpop.f32.mrb[4].mxu0  ;;  %v854_v48 = vpop.f32.mrb[4].mxu1 }
 0x1c6   : > { %v3241_v50 = vadd.f32 %v570_v41, %v546_v45  ;;  %v548_v12 = vpop.f32.mrb[5].mxu0  ;;  %v929_v51 = vadd.f32 %v928_v43, %v854_v48  ;;  %v856_v52 = vpop.f32.mrb[5].mxu1 }
 0x1c7   : > { %v549_v53 = vpop.f32.mrb[6].mxu0  ;;  %v857_v55 = vpop.f32.mrb[6].mxu1  ;;  %v3325_v12 = vsel %vm3124_vm11, 1.0, %v4007_v40  ;;  %vm4091_vm11 = vnez %v4064_v13 }
 0x1c8   : > { %v3246_v56 = vadd.f32 %v570_v41, %v549_v53  ;;  %1045 = vrot.lane.b32.xlu0 %v3241_v50, %s2597_s13  ;;  %v551_v57 = vpop.f32.mrb[7].mxu0  ;;  %v3251_v58 = vmul.f32 %v3239_v47, %v929_v51  ;;  %v859_v60 = vpop.f32.mrb[7].mxu1  ;;  %v930_v62 = vadd.f32 %v928_v43, %v857_v55  ;;  %v1009_v63 = vrot.slane %v3241_v50, 7 }
 0x1c9   : > { %v1014_v42 = vrot.slane %v3241_v50, 1 }
 0x1ca   : > { %1047 = vrot.lane.b32.xlu1 %v3246_v56, %s2597_s13  ;;  %v1010_v0 = vrot.slane %v3246_v56, 7  ;;  %v933_v1 = vand.u32 2147483647, %v3251_v58  ;;  %v3267_v3 = vmul.f32 %v3256_v59, %v930_v62  ;;  %v1015_v39 = vrot.slane %v3246_v56, 1 }
 0x1cc   : > { %v3274_v9 = vsel %vm1011_vm1, %v1010_v0, %v1009_v63  ;;  %v3278_v11 = vsel %vm1011_vm1, %v1009_v63, %v1010_v0  ;;  %v935_v14 = vadd.f32 %v933_v1, %v923_v61  ;;  %v934_v15 = vand.u32 2147483647, %v3267_v3 }
 0x1cd   : > { %1019 = vrot.lane.b32.xlu0 %v3274_v9, %s2597_s13  ;;  %v862_v18 = vpop.f32.mrb[8].mxu1  ;;  %v3329_v7 = vsel %vm1016_vm10, %v1014_v42, %v1015_v39  ;;  %v3338_v57 = vsel %vm1016_vm10, %v1015_v39, %v1014_v42  ;;  %v958_v61 = vstv %s3307_s11  ;;  %s3602_s11 = sld [smem:[#allocation4 + $0x12]] }
 0x1ce   : > { %1021 = vrot.lane.b32.xlu1 %v3278_v11, %s2597_s13  ;;  %v939_v19 = vadd.f32 %v938_v4, %v862_v18  ;;  %v864_v21 = vpop.f32.mrb[9].mxu1  ;;  %v936_v22 = vadd.f32 %v934_v15, %v924_v2 }
 0x1cf   : > { %v865_v30 = vpop.f32.mrb[10].mxu1 }
 0x1d0   : > { %v3296_v34 = vmul.f32 %v3286_v17, %v939_v19  ;;  %v940_v5 = vadd.f32 %v938_v4, %v865_v30  ;;  %v867_v35 = vpop.f32.mrb[11].mxu1  ;;  %v966_v30 = vstv %s2216_s21  ;;  %s3604_s21 = sld [smem:[#allocation4 + $0x17]] }
 0x1d1   : > { %1035 = vrot.lane.b32.xlu0 %v3274_v9, %s2598_s20  ;;  %v3361_v35 = vsel %vm4090_vm12, 1.0, %v4007_v40 }
 0x1d2   : > { %1037 = vrot.lane.b32.xlu1 %v3278_v11, %s2598_s20  ;;  %v943_v36 = vand.u32 2147483647, %v3296_v34  ;;  %v3304_v37 = vmul.f32 %v3293_v29, %v940_v5 }
 0x1d4   : > { %v945_v16 = vadd.f32 %v943_v36, %v935_v14  ;;  %v944_v23 = vand.u32 2147483647, %v3304_v37 }
 0x1d5   : > { %1061 = vrot.lane.b32.xlu0 %v3241_v50, %s2598_s20  ;;  %v870_v41 = vpop.f32.mrb[12].mxu1 }
 0x1d6   : > { %1063 = vrot.lane.b32.xlu1 %v3246_v56, %s2598_s20  ;;  %v946_v43 = vadd.f32 %v944_v23, %v936_v22  ;;  %v949_v45 = vadd.f32 %v948_v6, %v870_v41  ;;  %v872_v48 = vpop.f32.mrb[13].mxu1 }
 0x1d7   : > { %v873_v51 = vpop.f32.mrb[14].mxu1  ;;  %v976_v48 = vstv %s2217_s22  ;;  %s3612_s22 = sld [smem:[#allocation4 + $0x18]] }
 0x1d8   : > { %v3332_v52 = vmul.f32 %v3317_v27, %v949_v45  ;;  %v950_v53 = vadd.f32 %v948_v6, %v873_v51  ;;  %v875_v55 = vpop.f32.mrb[15].mxu1 }
 0x1d9   : > { %1071 = vrot.lane.b32.xlu0 %v3329_v7, %s2597_s13 }
 0x1da   : > { %1073 = vrot.lane.b32.xlu1 %v3338_v57, %s2597_s13  ;;  %v953_v8 = vand.u32 2147483647, %v3332_v52  ;;  %v3344_v60 = vmul.f32 %v3325_v12, %v950_v53  ;;  %v3383_v53 = vsel %vm3162_vm7, 1.0, %v4007_v40 }
 0x1dc   : > { %v954_v62 = vand.u32 2147483647, %v3344_v60  ;;  %v955_v63 = vadd.f32 %v953_v8, %v945_v16  ;;  %v3366_v16 = vsel %vm4091_vm11, 1.0, %v4007_v40 }
 0x1dd   : > { %1087 = vrot.lane.b32.xlu0 %v3329_v7, %s2598_s20  ;;  %v878_v0 = vpop.f32.mrb[16].mxu1 }
 0x1de   : > { %1089 = vrot.lane.b32.xlu1 %v3338_v57, %s2598_s20  ;;  %v3352_v1 = vadd.f32 %v958_v61, %v878_v0  ;;  %v880_v2 = vpop.f32.mrb[17].mxu1  ;;  %v956_v4 = vadd.f32 %v954_v62, %v946_v43 }
 0x1df   : > { %v881_v14 = vpop.f32.mrb[18].mxu1 }
 0x1e0   : > { %v961_v15 = vand.u32 2147483647, %v3352_v1  ;;  %v3355_v18 = vadd.f32 %v958_v61, %v881_v14  ;;  %v883_v19 = vpop.f32.mrb[19].mxu1 }
 0x1e1   : > { %v986_v19 = vstv %s3375_s23  ;;  %s3766_s23 = sld [smem:[#allocation4 + $0x19]] }
 0x1e2   : > { %v963_v21 = vadd.f32 %v961_v15, %v955_v63  ;;  %v962_v22 = vand.u32 2147483647, %v3355_v18  ;;  %v3388_v63 = vsel %vm3176_vm8, 1.0, %v4007_v40 }
 0x1e4   : > { %v964_v5 = vadd.f32 %v962_v22, %v956_v4  ;;  %v1335_v22 = vstv %s3378_s24  ;;  %s3800_s24 = sld [smem:[#allocation4 + $0x1a]] }
 0x1e5   : > { %v886_v36 = vpop.f32.mrb[20].mxu1 }
 0x1e6   : > { %v967_v6 = vadd.f32 %v966_v30, %v886_v36  ;;  %v888_v39 = vpop.f32.mrb[21].mxu1 }
 0x1e7   : > { %v889_v23 = vpop.f32.mrb[22].mxu1 }
 0x1e8   : > { %v3369_v41 = vmul.f32 %v3361_v35, %v967_v6  ;;  %v968_v42 = vadd.f32 %v966_v30, %v889_v23  ;;  %v891_v43 = vpop.f32.mrb[23].mxu1  ;;  %v3407_v30 = vsel %vm3185_vm4, 1.0, %v4007_v40 }
 0x1e9   : > { %4092 = vst [vmem:[#allocation16_spill] sm:$0xff] %v3407_v30  ;;  %v3412_v43 = vsel %vm3191_vm5, 1.0, %v4007_v40 }
 0x1ea   : > { %v971_v45 = vand.u32 2147483647, %v3369_v41  ;;  %v3373_v10 = vmul.f32 %v3366_v16, %v968_v42  ;;  %4093 = vst [vmem:[#allocation17_spill] sm:$0xff] %v3412_v43 }
 0x1ec   : > { %v973_v51 = vadd.f32 %v971_v45, %v963_v21  ;;  %v972_v13 = vand.u32 2147483647, %v3373_v10 }
 0x1ed   : > { %v894_v55 = vpop.f32.mrb[24].mxu1 }
 0x1ee   : > { %v974_v8 = vadd.f32 %v972_v13, %v964_v5  ;;  %v977_v61 = vadd.f32 %v976_v48, %v894_v55  ;;  %v896_v62 = vpop.f32.mrb[25].mxu1 }
 0x1ef   : > { %v897_v0 = vpop.f32.mrb[26].mxu1 }
 0x1f0   : > { %v3391_v2 = vmul.f32 %v3383_v53, %v977_v61  ;;  %v978_v4 = vadd.f32 %v976_v48, %v897_v0  ;;  %v899_v14 = vpop.f32.mrb[27].mxu1 }
 0x1f1   : > { %v1345_v14 = vstv %s3400_s26 }
 0x1f2   : > { %v981_v20 = vand.u32 2147483647, %v3391_v2  ;;  %v3395_v15 = vmul.f32 %v3388_v63, %v978_v4  ;;  %v996_v4 = vstv %s3398_s25 }
 0x1f4   : > { %v983_v21 = vadd.f32 %v981_v20, %v973_v51  ;;  %v982_v24 = vand.u32 2147483647, %v3395_v15 }
 0x1f5   : > { %v902_v5 = vpop.f32.mrb[28].mxu1  ;;  %v1263_v36 = vpop.f32.mrb[8].mxu0 }
 0x1f6   : > { %v984_v6 = vadd.f32 %v982_v24, %v974_v8  ;;  %v987_v39 = vadd.f32 %v986_v19, %v902_v5  ;;  %v904_v23 = vpop.f32.mrb[29].mxu1  ;;  %v1265_v42 = vpop.f32.mrb[9].mxu0  ;;  %v1336_v48 = vadd.f32 %v1335_v22, %v1263_v36 }
 0x1f7   : > { %v905_v45 = vpop.f32.mrb[30].mxu1  ;;  %v1266_v51 = vpop.f32.mrb[10].mxu0 }
 0x1f8   : > { %v3415_v25 = vmul.f32 %v3407_v30, %v987_v39  ;;  %v988_v13 = vadd.f32 %v986_v19, %v905_v45  ;;  %v907_v55 = vpop.f32.mrb[31].mxu1  ;;  %v1268_v61 = vpop.f32.mrb[11].mxu0  ;;  %v1337_v62 = vadd.f32 %v1335_v22, %v1266_v51  ;;  %v3423_v26 = vmul.f32 %v3223_v28, %v1336_v48 }
 0x1f9   : > { %v3432_v19 = vsel %vm3204_vm14, 1.0, %v4007_v40 }
 0x1fa   : > { %v991_v8 = vand.u32 2147483647, %v3415_v25  ;;  %v3419_v0 = vmul.f32 %v3412_v43, %v988_v13  ;;  %4094 = vst [vmem:[#allocation18_spill] sm:$0xff] %v3423_v26  ;;  %4095 = vst [vmem:[#allocation19_spill] sm:$0xff] %v3432_v19  ;;  %v3435_v5 = vmul.f32 %v3231_v44, %v1337_v62  ;;  %v1340_v31 = vand.u32 2147483647, %v3423_v26 }
 0x1fc   : > { %v993_v20 = vadd.f32 %v991_v8, %v983_v21  ;;  %v992_v24 = vand.u32 2147483647, %v3419_v0  ;;  %4096 = vst [vmem:[#allocation20_spill] sm:$0xff] %v3435_v5  ;;  %v3440_v21 = vsel %vm3210_vm2, 1.0, %v4007_v40 }
 0x1fd   : > { %v910_v22 = vpop.f32.mrb[32].mxu1  ;;  %v1271_v36 = vpop.f32.mrb[12].mxu0  ;;  %4097 = vst [vmem:[#allocation21_spill] sm:$0xff] %v3440_v21 }
 0x1fe   : > { %v994_v39 = vadd.f32 %v992_v24, %v984_v6  ;;  %v997_v23 = vadd.f32 %v996_v4, %v910_v22  ;;  %v912_v42 = vpop.f32.mrb[33].mxu1  ;;  %v1346_v45 = vadd.f32 %v1345_v14, %v1271_v36  ;;  %v1273_v48 = vpop.f32.mrb[13].mxu0  ;;  %v1341_v22 = vand.u32 2147483647, %v3435_v5 }
 0x1ff   : > { %v913_v51 = vpop.f32.mrb[34].mxu1  ;;  %v1274_v13 = vpop.f32.mrb[14].mxu0 }
 0x200   : > { %v3444_v55 = vmul.f32 %v3432_v19, %v997_v23  ;;  %v998_v61 = vadd.f32 %v996_v4, %v913_v51  ;;  %v3447_v6 = vmul.f32 %v3239_v47, %v1346_v45  ;;  %v1347_v62 = vadd.f32 %v1345_v14, %v1274_v13  ;;  %v1276_v8 = vpop.f32.mrb[15].mxu0  ;;  %v915_v24 = vpop.f32.mrb[35].mxu1 }
 0x201   : > { %v1355_v4 = vstv %s3426_s12 }
 0x202   : > { %4098 = vst [vmem:[#allocation22_spill] sm:$0xff] %v3447_v6  ;;  %v1001_v32 = vand.u32 2147483647, %v3444_v55  ;;  %v3452_v36 = vmul.f32 %v3440_v21, %v998_v61  ;;  %v1350_v42 = vand.u32 2147483647, %v3447_v6  ;;  %v3456_v48 = vmul.f32 %v3256_v59, %v1347_v62 }
 0x203   : > { %v1780_v6 = vstv %s3596_s9 }
 0x204   : > { %4099 = vst [vmem:[#allocation23_spill] sm:$0xff] %v3456_v48  ;;  %v1003_v14 = vadd.f32 %v1001_v32, %v993_v20  ;;  %v1002_v23 = vand.u32 2147483647, %v3452_v36  ;;  %v1352_v45 = vadd.f32 %v1350_v42, %v1340_v31  ;;  %v1351_v51 = vand.u32 2147483647, %v3456_v48 }
 0x205   : > { %v1279_v13 = vpop.f32.mrb[16].mxu0 }
 0x206   : > { %v1005_v61 = vadd.f32 1e-06, %v1003_v14  ;;  %v1004_v8 = vadd.f32 %v1002_v23, %v994_v39  ;;  %v1353_v24 = vadd.f32 %v1351_v51, %v1341_v22  ;;  %v1356_v40 = vadd.f32 %v1355_v4, %v1279_v13  ;;  %v1281_v62 = vpop.f32.mrb[17].mxu0 }
 0x207   : > { %v1282_v49 = vpop.f32.mrb[18].mxu0  ;;  %v554_v39 = vstv %s3458_s27  ;;  %v1365_v22 = vstv %s3461_s28 }
 0x208   : > { %2508 = vrcp.f32 %v1005_v61  ;;  %v1006_v5 = vadd.f32 1e-06, %v1004_v8  ;;  %v3466_v26 = vmul.f32 %v3286_v17, %v1356_v40  ;;  %v1357_v20 = vadd.f32 %v1355_v4, %v1282_v49  ;;  %v1284_v32 = vpop.f32.mrb[19].mxu0 }
 0x209   : > { %v555_v40 = vadd.f32 %v554_v39, %v3216_v33 }
 0x20a   : > { %4100 = vst [vmem:[#allocation24_spill] sm:$0xff] %v3466_v26  ;;  %2510 = vrcp.f32 %v1006_v5  ;;  %v1360_v31 = vand.u32 2147483647, %v3466_v26  ;;  %v3470_v42 = vmul.f32 %v3293_v29, %v1357_v20  ;;  %v556_v20 = vadd.f32 %v554_v39, %v3218_v38 }
 0x20b   : > { %v2163_v26 = vmul.f32 -1.442695, %v555_v40 }
 0x20c   : > { %4101 = vst [vmem:[#allocation25_spill] sm:$0xff] %v3470_v42  ;;  %v1362_v14 = vadd.f32 %v1360_v31, %v1352_v45  ;;  %v1361_v23 = vand.u32 2147483647, %v3470_v42  ;;  %v1375_v42 = vstv %s3472_s29 }
 0x20d   : > { %v1287_v51 = vpop.f32.mrb[20].mxu0  ;;  %2512 = vpow2.f32 %v2163_v26 }
 0x20e   : > { %v1363_v13 = vadd.f32 %v1361_v23, %v1353_v24  ;;  %v1366_v49 = vadd.f32 %v1365_v22, %v1287_v51  ;;  %v1289_v4 = vpop.f32.mrb[21].mxu0 }
 0x20f   : > { %v1290_v5 = vpop.f32.mrb[22].mxu0 }
 0x210   : > { %v3479_v61 = vmul.f32 %v3317_v27, %v1366_v49  ;;  %v1367_v8 = vadd.f32 %v1365_v22, %v1290_v5  ;;  %v1292_v62 = vpop.f32.mrb[23].mxu0 }
 0x212   : > { %4102 = vst [vmem:[#allocation26_spill] sm:$0xff] %v3479_v61  ;;  %v2509_v32 = vpop.eup %2508  ;;  %v1370_v45 = vand.u32 2147483647, %v3479_v61  ;;  %v3484_v31 = vmul.f32 %v3325_v12, %v1367_v8 }
 0x213   : > { %v3490_v33 = vmul.f32 %v2509_v32, %v3332_v52  ;;  %v3493_v24 = vmul.f32 %v2509_v32, %v3234_v46  ;;  %v3496_v22 = vmul.f32 %v2509_v32, %v3251_v58  ;;  %v3499_v38 = vmul.f32 %v2509_v32, %v3296_v34 }
 0x214   : > { %4103 = vst [vmem:[#allocation27_spill] sm:$0xff] %v3484_v31  ;;  %v2511_v39 = vpop.eup %2510  ;;  %v1371_v23 = vand.u32 2147483647, %v3484_v31  ;;  %v1372_v51 = vadd.f32 %v1370_v45, %v1362_v14  ;;  %v3503_v40 = vmul.f32 %v2509_v32, %v3352_v1  ;;  %v3506_v49 = vmul.f32 %v2509_v32, %v3369_v41 }
 0x215   : > { %v2164_v52 = vmul.f32 -1.442695, %v556_v20  ;;  %v1295_v4 = vpop.f32.mrb[24].mxu0  ;;  %v3509_v46 = vmul.f32 %v2511_v39, %v3344_v60  ;;  %v3512_v58 = vmul.f32 %v2511_v39, %v3244_v54  ;;  %v3515_v34 = vmul.f32 %v2511_v39, %v3267_v3 }
 0x216   : > { %v3517_v5 = vadd.f32 %v1375_v42, %v1295_v4  ;;  %v1297_v14 = vpop.f32.mrb[25].mxu0  ;;  %v1373_v8 = vadd.f32 %v1371_v23, %v1363_v13  ;;  %v3520_v1 = vmul.f32 %v2511_v39, %v3304_v37  ;;  %v3523_v62 = vmul.f32 %v2511_v39, %v3355_v18  ;;  %v3550_v23 = vpop.f32.mrb[36].mxu1 }
 0x217   : > { %v1298_v41 = vpop.f32.mrb[26].mxu0  ;;  %v3526_v60 = vmul.f32 %v2511_v39, %v3373_v10  ;;  %v3529_v54 = vmul.f32 %v2509_v32, %v3391_v2  ;;  %v3535_v37 = vmul.f32 %v2511_v39, %v3395_v15  ;;  %v3538_v26 = vmul.f32 %v2509_v32, %v3415_v25  ;;  %v1688_v25 = vpop.f32.mrb[37].mxu1 }
 0x218   : > { %4104 = vst [vmem:[#allocation28_spill] sm:$0xff] %v3517_v5  ;;  %v1378_v3 = vand.u32 2147483647, %v3517_v5  ;;  %v3532_v20 = vadd.f32 %v1375_v42, %v1298_v41  ;;  %v1300_v13 = vpop.f32.mrb[27].mxu0  ;;  %2514 = vpow2.f32 %v2164_v52  ;;  %v3541_v18 = vmul.f32 %v2509_v32, %v3444_v55  ;;  %v3555_v4 = vpop.f32.mrb[38].mxu1 }
 0x219   : > { %4105 = vst [vmem:[#allocation29_spill] sm:$0xff] %v3526_v60  ;;  %4106 = vst [vmem:[#allocation30_spill] sm:$0xff] %v3529_v54  ;;  %v3544_v10 = vmul.f32 %v2511_v39, %v3419_v0  ;;  %v3547_v2 = vmul.f32 %v2511_v39, %v3452_v36  ;;  %v1383_v15 = vstv %s3487_s30  ;;  %v1691_v32 = vpop.f32.mrb[39].mxu1 }
 0x21a   : > { %4107 = vst [vmem:[#allocation31_spill] sm:$0xff] %v3532_v20  ;;  %4108 = vst [vmem:[#allocation32_spill] sm:$0xff] %v3535_v37  ;;  %v1380_v45 = vadd.f32 %v1378_v3, %v1372_v51  ;;  %v1379_v42 = vand.u32 2147483647, %v3532_v20  ;;  %v2513_v3 = vpop.eup %2512 }
 0x21b   : > { %4109 = vst [vmem:[#allocation33_spill] sm:$0xff] %v3541_v18  ;;  %4110 = vst [vmem:[#allocation34_spill] sm:$0xff] %v3547_v2  ;;  %v3564_v25 = vpop.f32.mrb[40].mxu1 }
 0x21c   : > { %v1381_v52 = vadd.f32 %v1379_v42, %v1373_v8  ;;  %v1393_v42 = vstv %s3553_s4 }
 0x21d   : > { %v1303_v55 = vpop.f32.mrb[28].mxu0 }
 0x21e   : > { %v1384_v0 = vadd.f32 %v1383_v15, %v1303_v55  ;;  %v1305_v14 = vpop.f32.mrb[29].mxu0  ;;  %v1696_v55 = vpop.f32.mrb[41].mxu1 }
 0x21f   : > { %v1306_v41 = vpop.f32.mrb[30].mxu0  ;;  %v1403_v55 = vstv %s3567_s5 }
 0x220   : > { %v3558_v36 = vmul.f32 %v3361_v35, %v1384_v0  ;;  %v1385_v39 = vadd.f32 %v1383_v15, %v1306_v41  ;;  %v1308_v51 = vpop.f32.mrb[31].mxu0  ;;  %v3570_v0 = vpop.f32.mrb[42].mxu1  ;;  %v563_v15 = vadd.f32 1.0, %v2513_v3 }
 0x221   : > { %v1699_v51 = vpop.f32.mrb[43].mxu1 }
 0x222   : > { %4111 = vst [vmem:[#allocation35_spill] sm:$0xff] %v3558_v36  ;;  %v1388_v13 = vand.u32 2147483647, %v3558_v36  ;;  %v3562_v20 = vmul.f32 %v3366_v16, %v1385_v39  ;;  %v2515_v8 = vpop.eup %2514  ;;  %2516 = vrcp.f32 %v563_v15  ;;  %v3585_v15 = vld [vmem:[#allocation2 + $0x37] sm:$0xff]  ;;  %v3587_v51 = vld [vmem:[#allocation2 + $0x3f] sm:$0xff] }
 0x223   : > { %v564_v36 = vadd.f32 1.0, %v2515_v8  ;;  %v3579_v3 = vpop.f32.mrb[44].mxu1  ;;  %4115 = vst [vmem:[#allocation39_spill] sm:$0xff] %v3585_v15  ;;  %4116 = vst [vmem:[#allocation40_spill] sm:$0xff] %v3587_v51  ;;  %vm575_vm8 = vcmp.gt.f32.partialorder %v3585_v15, 0.0  ;;  %vm576_vm7 = vcmp.gt.f32.partialorder %v3587_v51, 0.0 }
 0x224   : > { %4112 = vst [vmem:[#allocation36_spill] sm:$0xff] %v3562_v20  ;;  %v1390_v32 = vadd.f32 %v1388_v13, %v1380_v45  ;;  %v1389_v14 = vand.u32 2147483647, %v3562_v20  ;;  %v1760_v20 = vstv %s3589_s7 }
 0x225   : > { %v1311_v41 = vpop.f32.mrb[32].mxu0  ;;  %2518 = vrcp.f32 %v564_v36 }
 0x226   : > { %v1391_v5 = vadd.f32 %v1389_v14, %v1381_v52  ;;  %v1394_v39 = vadd.f32 %v1393_v42, %v1311_v41  ;;  %v1313_v2 = vpop.f32.mrb[33].mxu0  ;;  %v1704_v52 = vpop.f32.mrb[45].mxu1 }
 0x227   : > { %v1314_v18 = vpop.f32.mrb[34].mxu0  ;;  %v1705_v14 = vpop.f32.mrb[46].mxu1 }
 0x228   : > { %v3573_v31 = vmul.f32 %v3383_v53, %v1394_v39  ;;  %v1395_v48 = vadd.f32 %v1393_v42, %v1314_v18  ;;  %v1316_v37 = vpop.f32.mrb[35].mxu0  ;;  %v1707_v18 = vpop.f32.mrb[47].mxu1 }
 0x22a   : > { %4113 = vst [vmem:[#allocation37_spill] sm:$0xff] %v3573_v31  ;;  %v1398_v45 = vand.u32 2147483647, %v3573_v31  ;;  %v3577_v13 = vmul.f32 %v3388_v63, %v1395_v48 }
 0x22c   : > { %4114 = vst [vmem:[#allocation38_spill] sm:$0xff] %v3577_v13  ;;  %v1400_v2 = vadd.f32 %v1398_v45, %v1390_v32  ;;  %v1399_v8 = vand.u32 2147483647, %v3577_v13 }
 0x22d   : > { %v1319_v41 = vpop.f32.mrb[36].mxu0 }
 0x22e   : > { %v1401_v37 = vadd.f32 %v1399_v8, %v1391_v5  ;;  %v1404_v42 = vadd.f32 %v1403_v55, %v1319_v41  ;;  %v1321_v36 = vpop.f32.mrb[37].mxu0  ;;  %v3610_v8 = vpop.f32.mrb[48].mxu1  ;;  %v1413_v41 = vstv %s3582_s6 }
 0x22f   : > { %v1322_v48 = vpop.f32.mrb[38].mxu0  ;;  %v1712_v18 = vpop.f32.mrb[49].mxu1 }
 0x230   : > { %v3594_v32 = vmul.f32 %v3407_v30, %v1404_v42  ;;  %v1405_v39 = vadd.f32 %v1403_v55, %v1322_v48  ;;  %v1324_v45 = vpop.f32.mrb[39].mxu0  ;;  %v2517_v55 = vpop.eup %2516 }
 0x231   : > { %v2519_v42 = vpop.eup %2518  ;;  %v4119_v45 = vmov 0.0  }
 0x232   : > { %4117 = vst [vmem:[#allocation41_spill] sm:$0xff] %v3594_v32  ;;  %v1408_v5 = vand.u32 2147483647, %v3594_v32  ;;  %v3608_v52 = vmul.f32 %v3412_v43, %v1405_v39  ;;  %v2166_v30 = vsel %vm575_vm8, 1.0, %v4119_v45  ;;  %v2167_v13 = vsel %vm576_vm7, 1.0, %v4119_v45  ;;  %v3618_v39 = vpop.f32.mrb[50].mxu1 }
 0x233   : > { %v1715_v51 = vpop.f32.mrb[51].mxu1 }
 0x234   : > { %4118 = vst [vmem:[#allocation42_spill] sm:$0xff] %v3608_v52  ;;  %v1410_v36 = vadd.f32 %v1408_v5, %v1400_v2  ;;  %v1409_v48 = vand.u32 2147483647, %v3608_v52  ;;  %v3621_v2 = vmul.f32 %v2517_v55, %v2166_v30  ;;  %v3623_v5 = vmul.f32 %v2519_v42, %v2167_v13  ;;  %v1718_v55 = vpop.f32.mrb[52].mxu1 }
 0x235   : > { %v1327_v43 = vpop.f32.mrb[40].mxu0  ;;  %v1770_v52 = vstv %s3591_s8  ;;  %v1790_v51 = vstv %s3598_s10 }
 0x236   : > { %v1411_v15 = vadd.f32 %v1409_v48, %v1401_v37  ;;  %v1414_v31 = vadd.f32 %v1413_v41, %v1327_v43  ;;  %v1329_v18 = vpop.f32.mrb[41].mxu0  ;;  %v1761_v37 = vadd.f32 %v1760_v20, %v3550_v23  ;;  %v1762_v43 = vadd.f32 %v1760_v20, %v3555_v4 }
 0x237   : > { %v1330_v61 = vpop.f32.mrb[42].mxu0  ;;  %v1798_v18 = vstv %s3604_s21  ;;  %v1772_v23 = vadd.f32 %v1770_v52, %v3570_v0  ;;  %v1781_v20 = vadd.f32 %v1780_v6, %v3579_v3  ;;  %v1782_v4 = vadd.f32 %v1780_v6, %v1705_v14 }
 0x238   : > { %v3627_v45 = vmul.f32 %v3432_v19, %v1414_v31  ;;  %v1415_v54 = vadd.f32 %v1413_v41, %v1330_v61  ;;  %v1332_v32 = vpop.f32.mrb[43].mxu0  ;;  %v1771_v31 = vadd.f32 %v1770_v52, %v3564_v25  ;;  %v1808_v61 = vstv %s3612_s22  ;;  %v1720_v41 = vpop.f32.mrb[53].mxu1 }
 0x239   : > { %v1031_v32 = vmul.f32 %v3496_v22, %v3274_v9  ;;  %v1032_v48 = vmul.f32 %v3515_v34, %v3278_v11  ;;  %v3652_v25 = vmul.f32 %v3503_v40, %v3241_v50  ;;  %v3656_v9 = vmul.f32 %v3523_v62, %v3246_v56 }
 0x23a   : > { %v3635_v60 = vpop.permute.xlu0 %1045  ;;  %v1418_v30 = vand.u32 2147483647, %v3627_v45  ;;  %v3639_v13 = vmul.f32 %v3440_v21, %v1415_v54  ;;  %v1721_v21 = vpop.f32.mrb[54].mxu1  ;;  %v3660_v6 = vmul.f32 %v3538_v26, %v3329_v7  ;;  %v3663_v22 = vmul.f32 %v3239_v47, %v1761_v37 }
 0x23b   : > { %v3666_v11 = vmul.f32 %v3256_v59, %v1762_v43  ;;  %v1723_v34 = vpop.f32.mrb[55].mxu1  ;;  %v3670_v50 = vmul.f32 %v3544_v10, %v3338_v57  ;;  %v3673_v56 = vmul.f32 %v3286_v17, %v1771_v31  ;;  %v3676_v7 = vmul.f32 %v3293_v29, %v1772_v23 }
 0x23c   : > { %v1048_v42 = vpop.permute.xlu1 %1047  ;;  %v1420_v19 = vadd.f32 %v1418_v30, %v1410_v36  ;;  %v1419_v54 = vand.u32 2147483647, %v3639_v13  ;;  %v3679_v47 = vmul.f32 %v3317_v27, %v1781_v20  ;;  %v3682_v59 = vmul.f32 %v3325_v12, %v1782_v4 }
 0x23d   : > { %v1799_v62 = vadd.f32 %v1798_v18, %v1718_v55  ;;  %v1800_v10 = vadd.f32 %v1798_v18, %v1721_v21  ;;  %v1765_v14 = vand.u32 2147483647, %v3663_v22  ;;  %v1766_v29 = vand.u32 2147483647, %v3666_v11  ;;  %v1678_v55 = vpop.f32.mrb[44].mxu0 }
 0x23e   : > { %v1422_v0 = vadd.f32 1e-06, %v1420_v19  ;;  %v1421_v3 = vadd.f32 %v1419_v54, %v1411_v15  ;;  %v3689_v15 = vadd.f32 %v1790_v51, %v3610_v8  ;;  %v1775_v12 = vand.u32 2147483647, %v3673_v56  ;;  %v1680_v4 = vpop.f32.mrb[45].mxu0 }
 0x23f   : > { %v1020_v40 = vpop.permute.xlu0 %1019  ;;  %v3693_v52 = vadd.f32 %v1790_v51, %v3618_v39  ;;  %v1785_v37 = vand.u32 2147483647, %v3679_v47  ;;  %v1786_v31 = vand.u32 2147483647, %v3682_v59  ;;  %v3703_v39 = vmul.f32 %v3366_v16, %v1800_v10  ;;  %v1681_v16 = vpop.f32.mrb[46].mxu0 }
 0x240   : > { %v1025_v19 = vmul.f32 %v3493_v24, %v1020_v40  ;;  %v1022_v26 = vpop.permute.xlu1 %1021  ;;  %2520 = vrcp.f32 %v1422_v0  ;;  %v1423_v57 = vadd.f32 1e-06, %v1421_v3  ;;  %v1726_v24 = vpop.f32.mrb[56].mxu1  ;;  %v4120_v23 = vstv %s3602_s11 }
 0x241   : > { %v1026_v17 = vmul.f32 %v3512_v58, %v1022_v26  ;;  %v1776_v58 = vand.u32 2147483647, %v3676_v7  ;;  %v1809_v43 = vadd.f32 %v1808_v61, %v1726_v24  ;;  %v1728_v18 = vpop.f32.mrb[57].mxu1  ;;  %v1751_v20 = vadd.f32 %v4120_v23, %v1678_v55  ;;  %v4123_v55 = vld [vmem:[#allocation22_spill] sm:$0xff] }
 0x242   : > { %v1033_v27 = vadd.f32 %v1031_v32, %v1025_v19  ;;  %2522 = vrcp.f32 %v1423_v57  ;;  %v3700_v32 = vmul.f32 %v3361_v35, %v1799_v62  ;;  %v1729_v41 = vpop.f32.mrb[58].mxu1  ;;  %v1051_v54 = vmul.f32 %v3490_v33, %v3635_v60  ;;  %v1683_v57 = vpop.f32.mrb[47].mxu0 }
 0x243   : > { %v1034_v36 = vadd.f32 %v1032_v48, %v1026_v17  ;;  %v1036_v21 = vpop.permute.xlu0 %1035  ;;  %v1793_v48 = vand.u32 2147483647, %v3689_v15  ;;  %v1794_v34 = vand.u32 2147483647, %v3693_v52  ;;  %v1810_v0 = vadd.f32 %v1808_v61, %v1729_v41  ;;  %v1731_v3 = vpop.f32.mrb[59].mxu1  ;;  %v4125_v41 = vld [vmem:[#allocation30_spill] sm:$0xff] }
 0x244   : > { %v1041_v8 = vmul.f32 %v3499_v38, %v1036_v21  ;;  %v1038_v30 = vpop.permute.xlu1 %1037  ;;  %v3710_v38 = vmul.f32 %v3383_v53, %v1809_v43  ;;  %v3717_v19 = vmul.f32 %v3223_v28, %v1751_v20  ;;  %v4121_v26 = vmov %v4120_v23  ;;  %v4122_v43 = vld [vmem:[#allocation29_spill] sm:$0xff]  ;;  %v4127_v3 = vld [vmem:[#allocation32_spill] sm:$0xff] }
 0x245   : > { %v1042_v51 = vmul.f32 %v3520_v1, %v1038_v30  ;;  %v1052_v1 = vmul.f32 %v3509_v46, %v1048_v42  ;;  %v1752_v53 = vadd.f32 %v4121_v26, %v1681_v16  ;;  %v1803_v33 = vand.u32 2147483647, %v3700_v32  ;;  %v4126_v16 = vld [vmem:[#allocation26_spill] sm:$0xff] }
 0x246   : > { %v1043_v35 = vadd.f32 %v1041_v8, %v1033_v27  ;;  %v1804_v60 = vand.u32 2147483647, %v3703_v39  ;;  %v3724_v27 = vmul.f32 %v3388_v63, %v1810_v0  ;;  %v1755_v46 = vand.u32 2147483647, %v3717_v19  ;;  %v4129_v26 = vld [vmem:[#allocation42_spill] sm:$0xff] }
 0x247   : > { %v1044_v40 = vadd.f32 %v1042_v51, %v1034_v36  ;;  %v1062_v62 = vpop.permute.xlu0 %1061  ;;  %v3728_v42 = vmul.f32 %v3231_v44, %v1752_v53  ;;  %v1813_v28 = vand.u32 2147483647, %v3710_v38  ;;  %v4124_v44 = vld [vmem:[#allocation41_spill] sm:$0xff] }
 0x248   : > { %v1053_v10 = vadd.f32 %v1051_v54, %v1043_v35  ;;  %v1064_v17 = vpop.permute.xlu1 %1063  ;;  %v1067_v21 = vmul.f32 %v3506_v49, %v1062_v62  ;;  %v1814_v8 = vand.u32 2147483647, %v3724_v27  ;;  %v1767_v20 = vadd.f32 %v1765_v14, %v1755_v46  ;;  %v1734_v46 = vpop.f32.mrb[60].mxu1 }
 0x249   : > { %v1054_v61 = vadd.f32 %v1052_v1, %v1044_v40  ;;  %v1068_v18 = vmul.f32 %v4122_v43, %v1064_v17  ;;  %v1756_v35 = vand.u32 2147483647, %v3728_v42  ;;  %v4128_v40 = vld [vmem:[#allocation23_spill] sm:$0xff]  ;;  %v1736_v43 = vpop.f32.mrb[61].mxu1 }
 0x24a   : > { %v3731_v24 = vpop.eup %2520  ;;  %v1059_v36 = vadd.f32 %v3652_v25, %v1053_v10  ;;  %v1777_v57 = vadd.f32 %v1775_v12, %v1767_v20  ;;  %v4130_v17 = vld [vmem:[#allocation27_spill] sm:$0xff]  ;;  %v4133_v12 = vld [vmem:[#allocation24_spill] sm:$0xff]  ;;  %v4134_v20 = vld [vmem:[#allocation33_spill] sm:$0xff] }
 0x24b   : > { %v1060_v63 = vadd.f32 %v3656_v9, %v1054_v61  ;;  %v1072_v30 = vpop.permute.xlu0 %1071  ;;  %v3740_v51 = vmul.f32 %v3731_v24, %v4123_v55  ;;  %v3744_v23 = vmul.f32 %v3731_v24, %v4124_v44  ;;  %v3750_v9 = vmul.f32 %v3731_v24, %v4126_v16  ;;  %v4140_v43 = vld [vmem:[#allocation36_spill] sm:$0xff] }
 0x24c   : > { %v2523_v4 = vpop.eup %2522  ;;  %v1069_v25 = vadd.f32 %v1067_v21, %v1059_v36  ;;  %v1077_v49 = vmul.f32 %v4125_v41, %v1072_v30  ;;  %v1074_v54 = vpop.permute.xlu1 %1073  ;;  %v1768_v10 = vadd.f32 %v1766_v29, %v1756_v35  ;;  %v4132_v30 = vld [vmem:[#allocation20_spill] sm:$0xff]  ;;  %v3777_v44 = vmul.f32 %v3731_v24, %v4133_v12 }
 0x24d   : > { %v1070_v0 = vadd.f32 %v1068_v18, %v1060_v63  ;;  %v1078_v1 = vmul.f32 %v4127_v3, %v1074_v54  ;;  %v3754_v62 = vmul.f32 %v2523_v4, %v4128_v40  ;;  %v3757_v53 = vmul.f32 %v2523_v4, %v4129_v26  ;;  %v4131_v18 = vld [vmem:[#allocation18_spill] sm:$0xff]  ;;  %v1737_v35 = vpop.f32.mrb[62].mxu1  ;;  %v4136_v40 = vld [vmem:[#allocation25_spill] sm:$0xff] }
 0x24e   : > { %v1079_v14 = vadd.f32 %v1077_v49, %v1069_v25  ;;  %v3764_v61 = vmul.f32 %v2523_v4, %v4130_v17  ;;  %v3770_v63 = vmul.f32 %v3731_v24, %v4131_v18  ;;  %v3773_v55 = vmul.f32 %v2523_v4, %v4132_v30  ;;  %v4141_v30 = vld [vmem:[#allocation37_spill] sm:$0xff] }
 0x24f   : > { %v1080_v36 = vadd.f32 %v1078_v1, %v1070_v0  ;;  %v1088_v21 = vpop.permute.xlu0 %1087  ;;  %v1778_v49 = vadd.f32 %v1776_v58, %v1768_v10  ;;  %v1787_v54 = vadd.f32 %v1785_v37, %v1777_v57  ;;  %v4135_v0 = vld [vmem:[#allocation34_spill] sm:$0xff]  ;;  %v1739_v1 = vpop.f32.mrb[63].mxu1  ;;  %v3788_v26 = vmul.f32 %v2523_v4, %v4136_v40  ;;  %v4138_v57 = vld [vmem:[#allocation35_spill] sm:$0xff] }
 0x250   : > { %v1085_v29 = vadd.f32 %v3660_v6, %v1079_v14  ;;  %v1093_v25 = vmul.f32 %v4134_v20, %v1088_v21  ;;  %v1090_v41 = vpop.permute.xlu1 %1089  ;;  %v4137_v6 = vld [vmem:[#allocation28_spill] sm:$0xff]  ;;  %v3804_v18 = vmul.f32 %v2523_v4, %v4140_v43  ;;  %v3808_v12 = vmul.f32 %v3731_v24, %v4141_v30  ;;  %v4144_v1 = vld [vmem:[#allocation38_spill] sm:$0xff] }
 0x251   : > { %v1086_v16 = vadd.f32 %v3670_v50, %v1080_v36  ;;  %v1094_v3 = vmul.f32 %v4135_v0, %v1090_v41  ;;  %v1470_v14 = vmul.f32 %v3731_v24, %v4137_v6  ;;  %v1795_v58 = vadd.f32 %v1793_v48, %v1787_v54  ;;  %v4139_v36 = vld [vmem:[#allocation31_spill] sm:$0xff]  ;;  %v1742_v41 = vpop.f32.mrb[64].mxu1 }
 0x252   : > { %v1095_v17 = vadd.f32 %v1093_v25, %v1085_v29  ;;  %v1788_v37 = vadd.f32 %v1786_v31, %v1778_v49  ;;  %v3798_v50 = vmul.f32 %v3731_v24, %v4138_v57  ;;  %v1471_v21 = vmul.f32 %v2523_v4, %v4139_v36  ;;  %v4142_v48 = vld [vmem:[#allocation39_spill] sm:$0xff]  ;;  %v4143_v49 = vld [vmem:[#allocation40_spill] sm:$0xff]  ;;  %v4146_v36 = vld [vmem:[#allocation17_spill] sm:$0xff] }
 0x253   : > { %v1096_v10 = vadd.f32 %v1094_v3, %v1086_v16  ;;  %v1805_v20 = vadd.f32 %v1803_v33, %v1795_v58  ;;  %v1818_v25 = vstv %s3766_s23  ;;  %v1744_v3 = vpop.f32.mrb[65].mxu1  ;;  %v3816_v40 = vmul.f32 %v2523_v4, %v4144_v1 }
 0x254   : > { %v1097_v29 = vsub.f32 %v4142_v48, %v1095_v17  ;;  %v1796_v31 = vadd.f32 %v1794_v34, %v1788_v37  ;;  %v1819_v16 = vadd.f32 %v1818_v25, %v1734_v46  ;;  %v1820_v0 = vadd.f32 %v1818_v25, %v1737_v35  ;;  %v1745_v34 = vpop.f32.mrb[66].mxu1  ;;  %v4145_v35 = vld [vmem:[#allocation16_spill] sm:$0xff] }
 0x255   : > { %v1098_v54 = vsub.f32 %v4143_v49, %v1096_v10  ;;  %v1815_v33 = vadd.f32 %v1813_v28, %v1805_v20  ;;  %v3825_v58 = vmul.f32 %v3731_v24, %v3627_v45  ;;  %v3831_v30 = vmul.f32 %v2523_v4, %v3639_v13 }
 0x256   : > { %v1099_v6 = vmul.f32 %v1097_v29, %v3621_v2  ;;  %v1806_v57 = vadd.f32 %v1804_v60, %v1796_v31  ;;  %v1821_v37 = vmul.f32 %v4145_v35, %v1819_v16  ;;  %v1822_v43 = vmul.f32 %v4146_v36, %v1820_v0  ;;  %v1747_v29 = vpop.f32.mrb[67].mxu1  ;;  %v4148_v35 = vld [vmem:[#allocation21_spill] sm:$0xff] }
 0x257   : > { %v1100_v46 = vmul.f32 %v1098_v54, %v3623_v5  ;;  %v1828_v3 = vstv %s3800_s24 }
 0x258   : > { %v1101_v25 = vadd.f32 %v1099_v6, %v1095_v17  ;;  %v1816_v60 = vadd.f32 %v1814_v8, %v1806_v57  ;;  %v1823_v20 = vand.u32 2147483647, %v1821_v37  ;;  %v1824_v31 = vand.u32 2147483647, %v1822_v43  ;;  %v4147_v17 = vld [vmem:[#allocation19_spill] sm:$0xff] }
 0x259   : > { %v1102_v28 = vadd.f32 %v1100_v46, %v1096_v10  ;;  %v1829_v54 = vadd.f32 %v1828_v3, %v1742_v41  ;;  %v1830_v16 = vadd.f32 %v1828_v3, %v1745_v34 }
 0x25a   : > { %1460 = vrot.lane.b32.xlu0 %v1101_v25, %s2597_s13  ;;  %v1426_v45 = vrot.slane %v1101_v25, 7  ;;  %v1430_v24 = vrot.slane %v1101_v25, 1  ;;  %v1825_v4 = vadd.f32 %v1823_v20, %v1815_v33  ;;  %v1826_v1 = vadd.f32 %v1824_v31, %v1816_v60 }
 0x25b   : > { %1462 = vrot.lane.b32.xlu1 %v1102_v28, %s2597_s13  ;;  %v1427_v0 = vrot.slane %v1102_v28, 7  ;;  %v1431_v13 = vrot.slane %v1102_v28, 1  ;;  %v1831_v6 = vmul.f32 %v4147_v17, %v1829_v54  ;;  %v1832_v8 = vmul.f32 %v4148_v35, %v1830_v16 }
 0x25c   : > { %v3840_v10 = vmul.f32 %v1470_v14, %v1101_v25  ;;  %v3842_v57 = vmul.f32 %v1471_v21, %v1102_v28 }
 0x25d   : > { %v1429_v36 = vsel %vm1011_vm1, %v1427_v0, %v1426_v45  ;;  %v1428_v41 = vsel %vm1011_vm1, %v1426_v45, %v1427_v0  ;;  %v1432_v34 = vsel %vm1016_vm10, %v1430_v24, %v1431_v13  ;;  %v1433_v33 = vsel %vm1016_vm10, %v1431_v13, %v1430_v24 }
 0x25e   : > { %1434 = vrot.lane.b32.xlu0 %v1429_v36, %s2597_s13  ;;  %v1446_v29 = vmul.f32 %v3740_v51, %v1429_v36  ;;  %v1447_v14 = vmul.f32 %v3754_v62, %v1428_v41  ;;  %v3856_v21 = vmul.f32 %v3744_v23, %v1432_v34  ;;  %v3859_v60 = vmul.f32 %v3757_v53, %v1433_v33 }
 0x25f   : > { %1436 = vrot.lane.b32.xlu1 %v1428_v41, %s2597_s13  ;;  %v1833_v20 = vand.u32 2147483647, %v1831_v6  ;;  %v1834_v31 = vand.u32 2147483647, %v1832_v8 }
 0x261   : > { %v1835_v3 = vadd.f32 %v1833_v20, %v1825_v4  ;;  %v1836_v45 = vadd.f32 %v1834_v31, %v1826_v1 }
 0x262   : > { %1450 = vrot.lane.b32.xlu0 %v1429_v36, %s2598_s20 }
 0x263   : > { %1452 = vrot.lane.b32.xlu1 %v1428_v41, %s2598_s20  ;;  %v1837_v24 = vadd.f32 1e-06, %v1835_v3  ;;  %v1838_v51 = vadd.f32 1e-06, %v1836_v45 }
 0x265   : > { %2524 = vrcp.f32 %v1837_v24 }
 0x266   : > { %1476 = vrot.lane.b32.xlu0 %v1101_v25, %s2598_s20  ;;  %2526 = vrcp.f32 %v1838_v51 }
 0x267   : > { %1478 = vrot.lane.b32.xlu1 %v1102_v28, %s2598_s20 }
 0x26a   : > { %1486 = vrot.lane.b32.xlu0 %v1432_v34, %s2597_s13 }
 0x26b   : > { %1488 = vrot.lane.b32.xlu1 %v1433_v33, %s2597_s13 }
 0x26e   : > { %1502 = vrot.lane.b32.xlu0 %v1432_v34, %s2598_s20 }
 0x26f   : > { %v2525_v23 = vpop.eup %2524  ;;  %1504 = vrot.lane.b32.xlu1 %v1433_v33, %s2598_s20 }
 0x270   : > { %v2527_v62 = vpop.eup %2526  ;;  %v3871_v53 = vmul.f32 %v2525_v23, %v3663_v22  ;;  %v3874_v54 = vmul.f32 %v2525_v23, %v3689_v15  ;;  %v3882_v16 = vmul.f32 %v2525_v23, %v1821_v37  ;;  %v3887_v13 = vmul.f32 %v2525_v23, %v3673_v56 }
 0x271   : > { %v3877_v25 = vmul.f32 %v2527_v62, %v3666_v11  ;;  %v3880_v28 = vmul.f32 %v2527_v62, %v3693_v52  ;;  %v3884_v0 = vmul.f32 %v2527_v62, %v1822_v43  ;;  %v3890_v4 = vmul.f32 %v2527_v62, %v3676_v7 }
 0x272   : > { %v3893_v22 = vmul.f32 %v2525_v23, %v3679_v47  ;;  %v3896_v15 = vmul.f32 %v2527_v62, %v3682_v59  ;;  %v3899_v11 = vmul.f32 %v2525_v23, %v3717_v19  ;;  %v3902_v52 = vmul.f32 %v2527_v62, %v3728_v42 }
 0x273   : > { %v3905_v37 = vmul.f32 %v2525_v23, %v3700_v32  ;;  %v3908_v56 = vmul.f32 %v2527_v62, %v3703_v39  ;;  %v3911_v7 = vmul.f32 %v2525_v23, %v3710_v38  ;;  %v3914_v47 = vmul.f32 %v2527_v62, %v3724_v27 }
 0x274   : > { %v3916_v59 = vmul.f32 %v2525_v23, %v1831_v6  ;;  %v3918_v43 = vmul.f32 %v2527_v62, %v1832_v8 }
 0x2cc   : > { %v1461_v19 = vpop.permute.xlu0 %1460 }
 0x2cd   : > { %v1463_v1 = vpop.permute.xlu1 %1462  ;;  %v1466_v6 = vmul.f32 %v3750_v9, %v1461_v19 }
 0x2ce   : > { %v1467_v33 = vmul.f32 %v3764_v61, %v1463_v1 }
 0x2d0   : > { %v1435_v42 = vpop.permute.xlu0 %1434 }
 0x2d1   : > { %v1440_v17 = vmul.f32 %v3770_v63, %v1435_v42  ;;  %v1437_v32 = vpop.permute.xlu1 %1436 }
 0x2d2   : > { %v1441_v35 = vmul.f32 %v3773_v55, %v1437_v32 }
 0x2d3   : > { %v1448_v39 = vadd.f32 %v1446_v29, %v1440_v17 }
 0x2d4   : > { %v1449_v36 = vadd.f32 %v1447_v14, %v1441_v35  ;;  %v1451_v41 = vpop.permute.xlu0 %1450 }
 0x2d5   : > { %v1456_v38 = vmul.f32 %v3777_v44, %v1451_v41  ;;  %v1453_v34 = vpop.permute.xlu1 %1452 }
 0x2d6   : > { %v1457_v27 = vmul.f32 %v3788_v26, %v1453_v34 }
 0x2d7   : > { %v1458_v8 = vadd.f32 %v1456_v38, %v1448_v39 }
 0x2d8   : > { %v1459_v20 = vadd.f32 %v1457_v27, %v1449_v36  ;;  %v1477_v31 = vpop.permute.xlu0 %1476 }
 0x2d9   : > { %v1468_v3 = vadd.f32 %v1466_v6, %v1458_v8  ;;  %v1479_v63 = vpop.permute.xlu1 %1478  ;;  %v1482_v29 = vmul.f32 %v3798_v50, %v1477_v31 }
 0x2da   : > { %v1469_v45 = vadd.f32 %v1467_v33, %v1459_v20  ;;  %v1483_v44 = vmul.f32 %v3804_v18, %v1479_v63 }
 0x2db   : > { %v1474_v55 = vadd.f32 %v3840_v10, %v1468_v3 }
 0x2dc   : > { %v1475_v14 = vadd.f32 %v3842_v57, %v1469_v45  ;;  %v1487_v24 = vpop.permute.xlu0 %1486 }
 0x2dd   : > { %v1484_v26 = vadd.f32 %v1482_v29, %v1474_v55  ;;  %v1492_v9 = vmul.f32 %v3808_v12, %v1487_v24  ;;  %v1489_v51 = vpop.permute.xlu1 %1488 }
 0x2de   : > { %v1485_v23 = vadd.f32 %v1483_v44, %v1475_v14  ;;  %v1493_v61 = vmul.f32 %v3816_v40, %v1489_v51 }
 0x2df   : > { %v1494_v62 = vadd.f32 %v1492_v9, %v1484_v26 }
 0x2e0   : > { %v1495_v19 = vadd.f32 %v1493_v61, %v1485_v23  ;;  %v1503_v1 = vpop.permute.xlu0 %1502 }
 0x2e1   : > { %v1500_v42 = vadd.f32 %v3856_v21, %v1494_v62  ;;  %v1508_v10 = vmul.f32 %v3825_v58, %v1503_v1  ;;  %v1505_v50 = vpop.permute.xlu1 %1504 }
 0x2e2   : > { %v1501_v57 = vadd.f32 %v3859_v60, %v1495_v19  ;;  %v1509_v18 = vmul.f32 %v3831_v30, %v1505_v50 }
 0x2e3   : > { %v1510_v17 = vadd.f32 %v1508_v10, %v1500_v42 }
 0x2e4   : > { %v1511_v32 = vadd.f32 %v1509_v18, %v1501_v57 }
 0x2e5   : > { %v1512_v12 = vsub.f32 %v4142_v48, %v1510_v17 }
 0x2e6   : > { %v1513_v35 = vsub.f32 %v4143_v49, %v1511_v32 }
 0x2e7   : > { %v1514_v40 = vmul.f32 %v1512_v12, %v3621_v2 }
 0x2e8   : > { %v1515_v39 = vmul.f32 %v1513_v35, %v3623_v5 }
 0x2e9   : > { %v1516_v36 = vadd.f32 %v1514_v40, %v1510_v17 }
 0x2ea   : > { %v1517_v41 = vadd.f32 %v1515_v39, %v1511_v32 }
 0x2eb   : > { %1875 = vrot.lane.b32.xlu0 %v1516_v36, %s2597_s13  ;;  %v1841_v58 = vrot.slane %v1516_v36, 7  ;;  %v1845_v21 = vrot.slane %v1516_v36, 1  ;;  %v1887_v60 = vmul.f32 %v3874_v54, %v1516_v36 }
 0x2ec   : > { %1877 = vrot.lane.b32.xlu1 %v1517_v41, %s2597_s13  ;;  %v1842_v30 = vrot.slane %v1517_v41, 7  ;;  %v1846_v38 = vrot.slane %v1517_v41, 1  ;;  %v1888_v34 = vmul.f32 %v3880_v28, %v1517_v41 }
 0x2ee   : > { %v1844_v27 = vsel %vm1011_vm1, %v1842_v30, %v1841_v58  ;;  %v1843_v6 = vsel %vm1011_vm1, %v1841_v58, %v1842_v30  ;;  %v1847_v8 = vsel %vm1016_vm10, %v1845_v21, %v1846_v38  ;;  %v1848_v33 = vsel %vm1016_vm10, %v1846_v38, %v1845_v21 }
 0x2ef   : > { %1849 = vrot.lane.b32.xlu0 %v1844_v27, %s2597_s13  ;;  %v1861_v54 = vmul.f32 %v3871_v53, %v1844_v27  ;;  %v1862_v20 = vmul.f32 %v3877_v25, %v1843_v6  ;;  %v1913_v28 = vmul.f32 %v3882_v16, %v1847_v8  ;;  %v1914_v31 = vmul.f32 %v3884_v0, %v1848_v33 }
 0x2f0   : > { %1851 = vrot.lane.b32.xlu1 %v1843_v6, %s2597_s13 }
 0x2f3   : > { %1865 = vrot.lane.b32.xlu0 %v1844_v27, %s2598_s20 }
 0x2f4   : > { %1867 = vrot.lane.b32.xlu1 %v1843_v6, %s2598_s20 }
 0x2f7   : > { %1891 = vrot.lane.b32.xlu0 %v1516_v36, %s2598_s20 }
 0x2f8   : > { %1893 = vrot.lane.b32.xlu1 %v1517_v41, %s2598_s20 }
 0x2fb   : > { %1901 = vrot.lane.b32.xlu0 %v1847_v8, %s2597_s13 }
 0x2fc   : > { %1903 = vrot.lane.b32.xlu1 %v1848_v33, %s2597_s13 }
 0x2ff   : > { %1917 = vrot.lane.b32.xlu0 %v1847_v8, %s2598_s20 }
 0x300   : > { %1919 = vrot.lane.b32.xlu1 %v1848_v33, %s2598_s20 }
 0x35d   : > { %v1876_v46 = vpop.permute.xlu0 %1875 }
 0x35e   : > { %v1878_v53 = vpop.permute.xlu1 %1877  ;;  %v1881_v24 = vmul.f32 %v3893_v22, %v1876_v46 }
 0x35f   : > { %v1882_v9 = vmul.f32 %v3896_v15, %v1878_v53 }
 0x361   : > { %v1850_v25 = vpop.permute.xlu0 %1849 }
 0x362   : > { %v1855_v16 = vmul.f32 %v3899_v11, %v1850_v25  ;;  %v1852_v0 = vpop.permute.xlu1 %1851 }
 0x363   : > { %v1856_v3 = vmul.f32 %v3902_v52, %v1852_v0 }
 0x364   : > { %v1863_v63 = vadd.f32 %v1861_v54, %v1855_v16 }
 0x365   : > { %v1864_v45 = vadd.f32 %v1862_v20, %v1856_v3  ;;  %v1866_v55 = vpop.permute.xlu0 %1865 }
 0x366   : > { %v1871_v29 = vmul.f32 %v3887_v13, %v1866_v55  ;;  %v1868_v14 = vpop.permute.xlu1 %1867 }
 0x367   : > { %v1872_v44 = vmul.f32 %v3890_v4, %v1868_v14 }
 0x368   : > { %v1873_v26 = vadd.f32 %v1871_v29, %v1863_v63 }
 0x369   : > { %v1874_v51 = vadd.f32 %v1872_v44, %v1864_v45  ;;  %v1892_v23 = vpop.permute.xlu0 %1891 }
 0x36a   : > { %v1883_v61 = vadd.f32 %v1881_v24, %v1873_v26  ;;  %v1894_v11 = vpop.permute.xlu1 %1893  ;;  %v1897_v52 = vmul.f32 %v3905_v37, %v1892_v23 }
 0x36b   : > { %v1884_v62 = vadd.f32 %v1882_v9, %v1874_v51  ;;  %v1898_v42 = vmul.f32 %v3908_v56, %v1894_v11 }
 0x36c   : > { %v1889_v19 = vadd.f32 %v1887_v60, %v1883_v61 }
 0x36d   : > { %v1890_v1 = vadd.f32 %v1888_v34, %v1884_v62  ;;  %v1902_v13 = vpop.permute.xlu0 %1901 }
 0x36e   : > { %v1899_v10 = vadd.f32 %v1897_v52, %v1889_v19  ;;  %v1907_v4 = vmul.f32 %v3911_v7, %v1902_v13  ;;  %v1904_v50 = vpop.permute.xlu1 %1903 }
 0x36f   : > { %v1900_v22 = vadd.f32 %v1898_v42, %v1890_v1  ;;  %v1908_v57 = vmul.f32 %v3914_v47, %v1904_v50 }
 0x370   : > { %v1909_v15 = vadd.f32 %v1907_v4, %v1899_v10 }
 0x371   : > { %v1910_v18 = vadd.f32 %v1908_v57, %v1900_v22  ;;  %v1918_v17 = vpop.permute.xlu0 %1917 }
 0x372   : > { %v1915_v32 = vadd.f32 %v1913_v28, %v1909_v15  ;;  %v1923_v12 = vmul.f32 %v3916_v59, %v1918_v17  ;;  %v1920_v37 = vpop.permute.xlu1 %1919 }
 0x373   : > { %v1916_v35 = vadd.f32 %v1914_v31, %v1910_v18  ;;  %v1924_v56 = vmul.f32 %v3918_v43, %v1920_v37 }
 0x374   : > { %v1925_v40 = vadd.f32 %v1923_v12, %v1915_v32 }
 0x375   : > { %v1926_v39 = vadd.f32 %v1924_v56, %v1916_v35 }
 0x376   : > { %v1927_v7 = vsub.f32 %v4142_v48, %v1925_v40 }
 0x377   : > { %v1928_v36 = vsub.f32 %v4143_v49, %v1926_v39 }
 0x378   : > { %v1929_v47 = vmul.f32 %v1927_v7, %v3621_v2 }
 0x379   : > { %v1930_v41 = vmul.f32 %v1928_v36, %v3623_v5 }
 0x37a   : > { %v1931_v58 = vadd.f32 %v1929_v47, %v1925_v40 }
 0x37b   : > { %v1932_v21 = vadd.f32 %v1930_v41, %v1926_v39 }
 0x37c   : > { %1933 = vst [vmem:[%s2690_s17 - $0x4] sm:$0xf0] %v1931_v58 }
 0x37d   : > { %1934 = vst [vmem:[%s2690_s17 + $0x4] sm:$0xf] %v1932_v21 }
 0x37e PF: > { %s14_s16 = sadd.s32 1, %s2593_s16   ;;  %s4150_s12 = smov %s2585_s14 }
 0x37f   : > { %p11_p3 = scmp.ge.s32.totalorder %s14_s16, 6   ;;  %s4151_s13 = smov %s2589_s15 }
 0x380   : > { %s4152_s14 = smov %s4155_s18  ;;  %s4153_s15 = smov %s4159_s19 }
 0x381   :  { %13 = sbr.rel (!%p11_p3) target bundleno = 3 (0x3), region = 277 }
 0x388   :  { %1962 = vsyncpa [#allocation5], 1 }
 0x389   :  { %1964 = vsyncpa [#allocation5 + $0x1], 1 }
 0x38a   :  { %1965 = vsyncmov [#allocation3] }
 0x38d   :  { %s1966_s17 = vpop.sfrf %1965 }
 0x38e   :  { %p2294_p5 = scmp.ne.s32.totalorder %s1966_s17, 0 }
 0x390   :  { %1970 = shalt.err (%p2294_p5)  }
 0x391   :  { %1972 = vsyncmov [#allocation3 + $0x1] }
 0x394   :  { %s1973_s20 = vpop.sfrf %1972 }
 0x395   :  { %p2295_p6 = scmp.ne.s32.totalorder %s1973_s20, 0 }
 0x397   :  { %1977 = shalt.err (%p2295_p6)  }
 0x398   :  { %1979 = vsyncmov [#allocation3 + $0x2] }
 0x39b   :  { %s1980_s25 = vpop.sfrf %1979 }
 0x39c   :  { %p2296_p7 = scmp.ne.s32.totalorder %s1980_s25, 0 }
 0x39e   :  { %1984 = shalt.err (%p2296_p7)  }
 0x39f   :  { %1986 = vsyncmov [#allocation3 + $0x3] }
 0x3a2   :  { %s1987_s18 = vpop.sfrf %1986 }
 0x3a3   :  { %p2297_p8 = scmp.ne.s32.totalorder %s1987_s18, 0 }
 0x3a5   :  { %1991 = shalt.err (%p2297_p8)  }

</bundles_post_ra>
